<compile_context>
chip_gen: v5e
topology: v5e:2x2
jax: 0.10.0
libtpu: 0.0.40
codegen_flags: <defaults>
</compile_context>

<pallas_src>
import numpy as np
import jax
import jax.numpy as jnp
from jax import lax
from jax.experimental import pallas as pl
from jax.experimental.pallas import tpu as pltpu

HEAD_ROWS = 8            # logits row replicated to 8 sublanes -> aligned (8,128) store


# ----------------------------------------------------------------------------
# Host-side construction of the static "structured conv" matrices
# ----------------------------------------------------------------------------
def _band_matrices(w, H, W, stride, scale=None):
    """Per-tap banded weights stacked along K (Bcat [KH*W*Cin, Wo*Cout]) and the
    stacked 0/1 row-gather Gcat [KH*Ho, H] for a 'same'-padded strided conv on the
    lane-dense [rows=H, lanes=W*Cin] layout:
        conv(x)[ho] = sum_kh (Gcat[kh*Ho+ho, :] @ x) @ Bcat[kh*W*Cin:(kh+1)*W*Cin]
    Optional per-output-channel `scale` (folded BatchNorm) is applied in f32."""
    KH, KW, Cin, Cout = w.shape
    ph, pw = (KH - 1) // 2, (KW - 1) // 2
    Ho = (H + 2 * ph - KH) // stride + 1
    Wo = (W + 2 * pw - KW) // stride + 1
    Bcat = np.zeros((KH * W * Cin, Wo * Cout), np.float32)
    for kh in range(KH):
        base = kh * W * Cin
        for kw in range(KW):
            for wo in range(Wo):
                wi = wo * stride + kw - pw
                if 0 <= wi < W:
                    Bcat[base + wi * Cin:base + (wi + 1) * Cin,
                         wo * Cout:(wo + 1) * Cout] = w[kh, kw]
    if scale is not None:
        Bcat *= np.tile(np.asarray(scale, np.float32), Wo)[None, :]
    G = np.zeros((KH * Ho, H), np.float32)
    for kh in range(KH):
        for ho in range(Ho):
            hi = ho * stride + kh - ph
            if 0 <= hi < H:
                G[kh * Ho + ho, hi] = 1.0
    return Bcat, G, Ho, Wo


def _blockdiag_1x1(w_io, W):
    """1x1 conv on the [rows, W*Cin] layout == matmul with kron(I_W, w)."""
    return np.kron(np.eye(W, dtype=np.float32), np.asarray(w_io, np.float32))


def _pool_matrices(Hs, Ws, H, W, C):
    """adaptive_avg_pool2d (divisible case) on the 2D layout: pooled = Pl @ s2d @ Pr.
    All values are 0 or 1/2^k -> exact in bf16."""
    fh, fw = Hs // H, Ws // W
    Pl = np.zeros((H, Hs), np.float32)
    for h in range(H):
        Pl[h, h * fh:(h + 1) * fh] = 1.0 / fh
    Pr = np.zeros((Ws * C, W * C), np.float32)
    for w in range(W):
        for b in range(fw):
            for c in range(C):
                Pr[(w * fw + b) * C + c, w * C + c] = 1.0 / fw
    return Pl, Pr


def _full_spec(shape):
    shape = tuple(int(d) for d in shape)
    nd = len(shape)
    # Constant index_map: weight block never changes across the grid -> DMA'd once.
    return pl.BlockSpec(shape, lambda n, _nd=nd: (0,) * _nd)


# ----------------------------------------------------------------------------
# The single fused XNet kernel
# ----------------------------------------------------------------------------
def _make_xnet_kernel(layer_cfgs, out_pad):

    def conv_banded(x16, G, B, KH):
        """Gather-first banded conv: one bf16 stacked row-gather matmul (exact, G is
        0/1), then per-tap banded bf16 matmuls accumulated in f32."""
        Ho = G.shape[0] // KH
        WC = B.shape[0] // KH
        xg = jnp.dot(G, x16, preferred_element_type=jnp.float32).astype(jnp.bfloat16)
        acc = None
        for kh in range(KH):
            t = jnp.dot(xg[kh * Ho:(kh + 1) * Ho, :],
                        B[kh * WC:(kh + 1) * WC, :],
                        preferred_element_type=jnp.float32)
            acc = t if acc is None else acc + t
        return acc                                            # [Ho, Wo*Cout] f32

    def kernel(*refs):
        x_ref, o_ref = refs[0], refs[-1]
        wrefs = refs[1:-1]
        pos = [0]

        def nxt():
            v = wrefs[pos[0]][...]
            pos[0] += 1
            return v

        x16 = x_ref[...]                                      # [H0, W0*Cin] bf16
        skip16 = None

        for cfg in layer_cfgs:
            if cfg["has_cs"]:
                bdcomp, mskip = nxt(), nxt()                  # 1x1 convs (block-diag)
                if cfg["pool_skip"]:
                    plm = nxt()                               # H-pool matrix (bf16)
                    # W-pool folded into mskip on the host (Pr @ BDskip)
                    t = jnp.dot(skip16, mskip,
                                preferred_element_type=jnp.float32).astype(jnp.bfloat16)
                    s_mid = jnp.dot(plm, t, preferred_element_type=jnp.float32)
                else:
                    s_mid = jnp.dot(skip16, mskip, preferred_element_type=jnp.float32)
                mid16 = (jnp.dot(x16, bdcomp, preferred_element_type=jnp.float32)
                         + s_mid).astype(jnp.bfloat16)        # compression + skip add
            else:
                mid16 = x16

            G, B, bias = nxt(), nxt(), nxt()                  # BN scale folded into B
            y = jnp.maximum(conv_banded(mid16, G, B, cfg["KH"]) + bias, 0.0)

            if cfg["has_att"]:
                bdpw, Ga, Ba = nxt(), nxt(), nxt()
                attin = jnp.dot(y.astype(jnp.bfloat16), bdpw,
                                preferred_element_type=jnp.float32).astype(jnp.bfloat16)
                att = conv_banded(attin, Ga, Ba, 3)           # attention_k = 3
                y = y * jax.nn.sigmoid(att)

            # dropout_rate=0.05 -> identity at inference; stochastic depth train-only
            x16 = y.astype(jnp.bfloat16)
            if skip16 is None:
                skip16 = x16                                  # layer-0 output is skip

        # Fused head: AdaptiveAvgPool2d((1,1)) + Flatten + Linear.
        mhead, bhead = nxt(), nxt()                           # W-mean folded, 128-pad
        pooled = jnp.mean(x16.astype(jnp.float32), axis=0, keepdims=True)
        logits = jnp.dot(pooled.astype(jnp.bfloat16), mhead,
                         preferred_element_type=jnp.float32) + bhead      # [1, 128]
        o_ref[...] = jnp.broadcast_to(logits, (HEAD_ROWS, out_pad))

    return kernel


def _layer_weight_arrays(p):
    cfg = p["cfg"]
    arrs = []
    if cfg["has_cs"]:
        arrs += [p["BDcomp"], p["Mskip"]]
        if cfg["pool_skip"]:
            arrs.append(p["Pl"])
    arrs += [p["Gmain"], p["Bmain"], p["bias"]]
    if cfg["has_att"]:
        arrs += [p["BDpw"], p["Gatt"], p["Batt"]]
    return arrs


def xnet_forward(layers, head, x_nchw):
    x = jnp.transpose(x_nchw, (0, 2, 3, 1)).astype(jnp.float32)      # NCHW -> NHWC
    n, h, w, c = x.shape
    x2d = x.reshape(n * h, w * c).astype(jnp.bfloat16)               # lane-dense 2D

    weights = []
    for p in layers:
        weights += _layer_weight_arrays(p)
    weights += [head["Mhead"], head["bias"]]
    layer_cfgs = [p["cfg"] for p in layers]
    out_pad = int(head["Mhead"].shape[1])

    res = pl.pallas_call(
        _make_xnet_kernel(layer_cfgs, out_pad),
        out_shape=jax.ShapeDtypeStruct((n * HEAD_ROWS, out_pad), jnp.float32),
        grid=(n,),                                                   # 1 image / step
        in_specs=[pl.BlockSpec((h, w * c), lambda i: (i, 0))]
                 + [_full_spec(a.shape) for a in weights],
        out_specs=pl.BlockSpec((HEAD_ROWS, out_pad), lambda i: (i, 0)),
        compiler_params=pltpu.CompilerParams(
            dimension_semantics=("parallel",),       # even >=2-step grid: both v7x TCs
            vmem_limit_bytes=64 * 1024 * 1024),      # fits v7x's 64 MiB with headroom
    )(x2d, *weights)
    return res.reshape(n, HEAD_ROWS, out_pad)[:, 0, :head["num_classes"]]


# ----------------------------------------------------------------------------
# Parameter init mirroring XNet.__init__ (+ static matrix construction)
# ----------------------------------------------------------------------------
def _winit(key, shape, fan_in):
    bound = 1.0 / float(np.sqrt(fan_in))
    return jax.random.uniform(key, shape, jnp.float32, -bound, bound)


def init_xnet(key, *, a, g_init, b, N, downsample_layer, pool, in_channels,
              num_classes, hw):
    N = int(N)
    channels_out = (np.array([2 ** (5 + i) for i in range(N)]) * a).astype(np.int64)
    channels_in = [in_channels] + [int(c) for c in channels_out]
    compression = [1, g_init]
    for _ in range(N - 2):
        step = (g_init * b - g_init) / (N - 2)
        compression.append(compression[-1] + step)

    H, W = hw
    keys = iter(jax.random.split(key, N * 6 + 2))
    layers = []
    skip_hw = None
    skip_ch = int(channels_out[0])

    for i in range(N):
        c1, c2 = int(channels_in[i]), int(channels_out[i])
        comp = compression[i]
        k = 5 if i == 0 else 3
        stride = 2 if (i in downsample_layer and (not pool)) else 1
        pool_l = 2 if (i in downsample_layer and pool) else None
        attention = (i != 0)
        use_skip = (i != 0)
        # TODO(synk): MaxPool2d (pool=True configs) not implemented in the fused kernel.
        assert pool_l is None, "MaxPool2d path not implemented"
        # TODO(synk): comp==1 with use_skip shape-mismatches in the original module too;
        # only the combinations exercised by XNet are implemented.
        assert (i == 0 and comp == 1 and not use_skip) or (i > 0 and comp > 1 and use_skip)

        c_mid = int(c2 // comp)
        p_l, ref = {}, {}
        cfg = dict(H=H, W=W, KH=k, stride=stride, C2=c2,
                   has_cs=use_skip, has_att=attention, pool_skip=False)

        if use_skip:
            w_comp = _winit(next(keys), (c1, c_mid), c1)              # 1x1
            w_skip = _winit(next(keys), (skip_ch, c_mid), skip_ch)    # 1x1 (skip_k=1)
            BDcomp = _blockdiag_1x1(np.asarray(w_comp), W)
            BDskip = _blockdiag_1x1(np.asarray(w_skip), W)
            Hs, Ws = skip_hw
            # TODO(synk): non-divisible adaptive average pooling not implemented.
            assert Hs % H == 0 and Ws % W == 0
            cfg["Hs"], cfg["Ws"] = Hs, Ws
            if (Hs, Ws) != (H, W):
                Pl, Pr = _pool_matrices(Hs, Ws, H, W, skip_ch)
                cfg["pool_skip"] = True
                p_l["Pl"] = jnp.asarray(Pl, jnp.bfloat16)             # exact in bf16
                Mskip = Pr @ BDskip                                   # fold W-pool+1x1
            else:
                Mskip = BDskip
            p_l["BDcomp"] = jnp.asarray(BDcomp, jnp.bfloat16)
            p_l["Mskip"] = jnp.asarray(Mskip, jnp.bfloat16)
            ref["w_comp"] = w_comp.astype(jnp.bfloat16)
            ref["w_skip"] = w_skip.astype(jnp.bfloat16)

        main_in = c_mid if use_skip else c1
        w_main = _winit(next(keys), (k, k, main_in, c2), main_in * k * k)

        # BatchNorm2d(c2), eval mode, folded: scale into the banded weights (f32 fold
        # before the bf16 cast), shift kept as a lane-tiled bias.
        gamma = np.ones(c2, np.float32); beta = np.zeros(c2, np.float32)
        rmean = np.zeros(c2, np.float32); rvar = np.ones(c2, np.float32)
        scale_ch = gamma / np.sqrt(rvar + 1e-5)
        bias_ch = beta - rmean * scale_ch

        Bcat, G, Ho, Wo = _band_matrices(np.asarray(w_main, np.float32), H, W, stride,
                                         scale=scale_ch)
        p_l["Gmain"] = jnp.asarray(G, jnp.bfloat16)                   # 0/1, exact
        p_l["Bmain"] = jnp.asarray(Bcat, jnp.bfloat16)
        p_l["bias"] = jnp.asarray(np.tile(bias_ch, Wo)[None, :], jnp.float32)
        ref["w_main"] = w_main.astype(jnp.bfloat16)
        ref["scale_ch"] = jnp.asarray(scale_ch)
        ref["bias_ch"] = jnp.asarray(bias_ch)

        if attention:
            c_att = int(c2 // comp)                                   # attention_lite
            w_pw = _winit(next(keys), (c2, c_att), c2)
            w_att = _winit(next(keys), (3, 3, c_att, c2), c_att * 9)
            p_l["BDpw"] = jnp.asarray(_blockdiag_1x1(np.asarray(w_pw), Wo), jnp.bfloat16)
            Ba, Ga, _, _ = _band_matrices(np.asarray(w_att, np.float32), Ho, Wo, 1)
            p_l["Batt"] = jnp.asarray(Ba, jnp.bfloat16)
            p_l["Gatt"] = jnp.asarray(Ga, jnp.bfloat16)
            ref["w_pw"] = w_pw.astype(jnp.bfloat16)
            ref["w_att"] = w_att.astype(jnp.bfloat16)

        cfg["Ho"], cfg["Wo"] = Ho, Wo
        p_l["cfg"] = cfg
        p_l["ref"] = ref
        layers.append(p_l)

        if i == 0:
            skip_hw = (Ho, Wo)
        H, W = Ho, Wo

    # Head: AdaptiveAvgPool2d((1,1)) + Flatten + Linear.  W-mean folded into Mhead,
    # output columns zero-padded to 128 so the only store is an unmasked (8,128) tile.
    c_last = int(channels_out[-1])
    w_head = _winit(next(keys), (c_last, num_classes), c_last)
    b_head = _winit(next(keys), (num_classes,), c_last)
    out_pad = max(128, -(-num_classes // 128) * 128)
    Mhead = np.zeros((W * c_last, out_pad), np.float32)
    Mhead[:, :num_classes] = np.tile(np.asarray(w_head, np.float32), (W, 1)) / W
    bias_pad = np.zeros((1, out_pad), np.float32)
    bias_pad[0, :num_classes] = np.asarray(b_head, np.float32)
    head = dict(w=w_head, b=b_head, num_classes=num_classes,
                Mhead=jnp.asarray(Mhead, jnp.bfloat16),
                bias=jnp.asarray(bias_pad, jnp.float32))
    return layers, head


# ----------------------------------------------------------------------------
# Pure-XLA reference with matching bf16 rounding points (self-check)
# ----------------------------------------------------------------------------
def _conv_ref(x, w, stride):
    k = w.shape[0]
    p = (k - 1) // 2
    return lax.conv_general_dilated(
        x, w, window_strides=(stride, stride), padding=[(p, p), (p, p)],
        dimension_numbers=("NHWC", "HWIO", "NHWC"),
        preferred_element_type=jnp.float32)


def _conv1x1_ref(x, w_io):
    return jnp.einsum("nhwi,io->nhwo", x, w_io, preferred_element_type=jnp.float32)


def _adaptive_pool_ref(x, H, W):
    n, hs, ws, c = x.shape
    return x.reshape(n, H, hs // H, W, ws // W, c).mean(axis=(2, 4))


def ref_forward(layers, head, x_nchw):
    x = jnp.transpose(x_nchw, (0, 2, 3, 1)).astype(jnp.float32).astype(jnp.bfloat16)
    skip = None
    for p in layers:
        cfg, r = p["cfg"], p["ref"]
        if cfg["has_cs"]:
            s = _adaptive_pool_ref(skip.astype(jnp.float32), cfg["H"], cfg["W"])
            s = s.astype(jnp.bfloat16)
            mid = (_conv1x1_ref(x, r["w_comp"]) + _conv1x1_ref(s, r["w_skip"]))
            mid = mid.astype(jnp.bfloat16)
        else:
            mid = x
        y = _conv_ref(mid, r["w_main"], cfg["stride"])
        y = jnp.maximum(y * r["scale_ch"] + r["bias_ch"], 0.0)
        if cfg["has_att"]:
            y16 = y.astype(jnp.bfloat16)
            attin = _conv1x1_ref(y16, r["w_pw"]).astype(jnp.bfloat16)
            att = _conv_ref(attin, r["w_att"], 1)
            y = y * jax.nn.sigmoid(att)
        x = y.astype(jnp.bfloat16)
        if skip is None:
            skip = x
    pooled = jnp.mean(x.astype(jnp.float32), axis=(1, 2))
    return jnp.dot(pooled, head["w"]) + head["b"]


if __name__ == "__main__":
    key = jax.random.PRNGKey(0)
    kx, kp = jax.random.split(key)
    # small config: a=0.25, g_init=4, b=1.0, N=3, downsample at layer 1 (stride-2), no pool
    # -> channels_out = [8, 16, 32], compression = [1, 4, 4]
    x = jax.random.normal(kx, (2, 3, 16, 16), jnp.float32)            # NCHW like PyTorch
    layers, head = init_xnet(kp, a=0.25, g_init=4, b=1.0, N=3, downsample_layer=(1,),
                             pool=False, in_channels=3, num_classes=10, hw=(16, 16))

    fwd = jax.jit(lambda xx: xnet_forward(layers, head, xx))
    out = fwd(x)
    jax.block_until_ready(out)
    assert out.shape == (2, 10) and out.dtype == jnp.float32

    ref = ref_forward(layers, head, x)
    np.testing.assert_allclose(np.asarray(out), np.asarray(ref), rtol=2e-2, atol=2e-2)
    print("KERNEL_OK")
</pallas_src>

<mosaic_0001>
module attributes {stable_mosaic.version = 11 : i64} {
  func.func @kernel(%arg0: i32, %arg1: memref<16x48xbf16, #tpu.memory_space<vmem>>, %arg2: memref<80x16xbf16, #tpu.memory_space<vmem>>, %arg3: memref<240x128xbf16, #tpu.memory_space<vmem>>, %arg4: memref<1x128xf32, #tpu.memory_space<vmem>>, %arg5: memref<128x64xbf16, #tpu.memory_space<vmem>>, %arg6: memref<128x64xbf16, #tpu.memory_space<vmem>>, %arg7: memref<24x16xbf16, #tpu.memory_space<vmem>>, %arg8: memref<192x128xbf16, #tpu.memory_space<vmem>>, %arg9: memref<1x128xf32, #tpu.memory_space<vmem>>, %arg10: memref<128x32xbf16, #tpu.memory_space<vmem>>, %arg11: memref<24x8xbf16, #tpu.memory_space<vmem>>, %arg12: memref<96x128xbf16, #tpu.memory_space<vmem>>, %arg13: memref<128x64xbf16, #tpu.memory_space<vmem>>, %arg14: memref<128x64xbf16, #tpu.memory_space<vmem>>, %arg15: memref<8x16xbf16, #tpu.memory_space<vmem>>, %arg16: memref<24x8xbf16, #tpu.memory_space<vmem>>, %arg17: memref<192x256xbf16, #tpu.memory_space<vmem>>, %arg18: memref<1x256xf32, #tpu.memory_space<vmem>>, %arg19: memref<256x64xbf16, #tpu.memory_space<vmem>>, %arg20: memref<24x8xbf16, #tpu.memory_space<vmem>>, %arg21: memref<192x256xbf16, #tpu.memory_space<vmem>>, %arg22: memref<256x128xbf16, #tpu.memory_space<vmem>>, %arg23: memref<1x128xf32, #tpu.memory_space<vmem>>, %arg24: memref<8x128xf32, #tpu.memory_space<vmem>>) attributes {dimension_semantics = [#tpu.dimension_semantics<parallel>], iteration_bounds = array<i64: 2>, scalar_prefetch = 0 : i64, scratch_operands = 0 : i64, tpu.core_type = #tpu.core_type<tc>, window_params = [{transform_indices = @transform_0, window_bounds = array<i64: 16, 48>}, {pipeline_mode = #tpu.pipeline_mode<synchronous>, transform_indices = @transform_1, window_bounds = array<i64: 80, 16>}, {pipeline_mode = #tpu.pipeline_mode<synchronous>, transform_indices = @transform_2, window_bounds = array<i64: 240, 128>}, {pipeline_mode = #tpu.pipeline_mode<synchronous>, transform_indices = @transform_3, window_bounds = array<i64: 1, 128>}, {pipeline_mode = #tpu.pipeline_mode<synchronous>, transform_indices = @transform_4, window_bounds = array<i64: 128, 64>}, {pipeline_mode = #tpu.pipeline_mode<synchronous>, transform_indices = @transform_5, window_bounds = array<i64: 128, 64>}, {pipeline_mode = #tpu.pipeline_mode<synchronous>, transform_indices = @transform_6, window_bounds = array<i64: 24, 16>}, {pipeline_mode = #tpu.pipeline_mode<synchronous>, transform_indices = @transform_7, window_bounds = array<i64: 192, 128>}, {pipeline_mode = #tpu.pipeline_mode<synchronous>, transform_indices = @transform_8, window_bounds = array<i64: 1, 128>}, {pipeline_mode = #tpu.pipeline_mode<synchronous>, transform_indices = @transform_9, window_bounds = array<i64: 128, 32>}, {pipeline_mode = #tpu.pipeline_mode<synchronous>, transform_indices = @transform_10, window_bounds = array<i64: 24, 8>}, {pipeline_mode = #tpu.pipeline_mode<synchronous>, transform_indices = @transform_11, window_bounds = array<i64: 96, 128>}, {pipeline_mode = #tpu.pipeline_mode<synchronous>, transform_indices = @transform_12, window_bounds = array<i64: 128, 64>}, {pipeline_mode = #tpu.pipeline_mode<synchronous>, transform_indices = @transform_13, window_bounds = array<i64: 128, 64>}, {pipeline_mode = #tpu.pipeline_mode<synchronous>, transform_indices = @transform_14, window_bounds = array<i64: 8, 16>}, {pipeline_mode = #tpu.pipeline_mode<synchronous>, transform_indices = @transform_15, window_bounds = array<i64: 24, 8>}, {pipeline_mode = #tpu.pipeline_mode<synchronous>, transform_indices = @transform_16, window_bounds = array<i64: 192, 256>}, {pipeline_mode = #tpu.pipeline_mode<synchronous>, transform_indices = @transform_17, window_bounds = array<i64: 1, 256>}, {pipeline_mode = #tpu.pipeline_mode<synchronous>, transform_indices = @transform_18, window_bounds = array<i64: 256, 64>}, {pipeline_mode = #tpu.pipeline_mode<synchronous>, transform_indices = @transform_19, window_bounds = array<i64: 24, 8>}, {pipeline_mode = #tpu.pipeline_mode<synchronous>, transform_indices = @transform_20, window_bounds = array<i64: 192, 256>}, {pipeline_mode = #tpu.pipeline_mode<synchronous>, transform_indices = @transform_21, window_bounds = array<i64: 256, 128>}, {pipeline_mode = #tpu.pipeline_mode<synchronous>, transform_indices = @transform_22, window_bounds = array<i64: 1, 128>}, {transform_indices = @transform_23, window_bounds = array<i64: 8, 128>}]} {
    %c0 = arith.constant 0 : index
    %c0_0 = arith.constant 0 : index
    %0 = vector.load %arg1[%c0, %c0_0] : memref<16x48xbf16, #tpu.memory_space<vmem>>, vector<16x48xbf16>
    %c0_1 = arith.constant 0 : index
    %c0_2 = arith.constant 0 : index
    %1 = vector.load %arg2[%c0_1, %c0_2] : memref<80x16xbf16, #tpu.memory_space<vmem>>, vector<80x16xbf16>
    %c0_3 = arith.constant 0 : index
    %c0_4 = arith.constant 0 : index
    %2 = vector.load %arg3[%c0_3, %c0_4] : memref<240x128xbf16, #tpu.memory_space<vmem>>, vector<240x128xbf16>
    %c0_5 = arith.constant 0 : index
    %c0_6 = arith.constant 0 : index
    %3 = vector.load %arg4[%c0_5, %c0_6] : memref<1x128xf32, #tpu.memory_space<vmem>>, vector<1x128xf32>
    %cst = arith.constant dense<0.000000e+00> : vector<80x48xf32>
    %4 = tpu.matmul %1, %0, %cst {dimension_numbers = #tpu.dot_dimension_numbers<[1], [0], [0], [1], [0, 0, 1, 1], [], []>} : vector<80x16xbf16>, vector<16x48xbf16>, vector<80x48xf32> -> vector<80x48xf32>
    %5 = arith.truncf %4 : vector<80x48xf32> to vector<80x48xbf16>
    %6 = vector.extract_strided_slice %5 {offsets = [0, 0], sizes = [16, 48], strides = [1, 1]} : vector<80x48xbf16> to vector<16x48xbf16>
    %7 = vector.extract_strided_slice %2 {offsets = [0, 0], sizes = [48, 128], strides = [1, 1]} : vector<240x128xbf16> to vector<48x128xbf16>
    %cst_7 = arith.constant dense<0.000000e+00> : vector<16x128xf32>
    %8 = tpu.matmul %6, %7, %cst_7 {dimension_numbers = #tpu.dot_dimension_numbers<[1], [0], [0], [1], [0, 0, 1, 1], [], []>} : vector<16x48xbf16>, vector<48x128xbf16>, vector<16x128xf32> -> vector<16x128xf32>
    %9 = vector.extract_strided_slice %5 {offsets = [16, 0], sizes = [16, 48], strides = [1, 1]} : vector<80x48xbf16> to vector<16x48xbf16>
    %10 = vector.extract_strided_slice %2 {offsets = [48, 0], sizes = [48, 128], strides = [1, 1]} : vector<240x128xbf16> to vector<48x128xbf16>
    %cst_8 = arith.constant dense<0.000000e+00> : vector<16x128xf32>
    %11 = tpu.matmul %9, %10, %cst_8 {dimension_numbers = #tpu.dot_dimension_numbers<[1], [0], [0], [1], [0, 0, 1, 1], [], []>} : vector<16x48xbf16>, vector<48x128xbf16>, vector<16x128xf32> -> vector<16x128xf32>
    %12 = arith.addf %8, %11 : vector<16x128xf32>
    %13 = vector.extract_strided_slice %5 {offsets = [32, 0], sizes = [16, 48], strides = [1, 1]} : vector<80x48xbf16> to vector<16x48xbf16>
    %14 = vector.extract_strided_slice %2 {offsets = [96, 0], sizes = [48, 128], strides = [1, 1]} : vector<240x128xbf16> to vector<48x128xbf16>
    %cst_9 = arith.constant dense<0.000000e+00> : vector<16x128xf32>
    %15 = tpu.matmul %13, %14, %cst_9 {dimension_numbers = #tpu.dot_dimension_numbers<[1], [0], [0], [1], [0, 0, 1, 1], [], []>} : vector<16x48xbf16>, vector<48x128xbf16>, vector<16x128xf32> -> vector<16x128xf32>
    %16 = arith.addf %12, %15 : vector<16x128xf32>
    %17 = vector.extract_strided_slice %5 {offsets = [48, 0], sizes = [16, 48], strides = [1, 1]} : vector<80x48xbf16> to vector<16x48xbf16>
    %18 = vector.extract_strided_slice %2 {offsets = [144, 0], sizes = [48, 128], strides = [1, 1]} : vector<240x128xbf16> to vector<48x128xbf16>
    %cst_10 = arith.constant dense<0.000000e+00> : vector<16x128xf32>
    %19 = tpu.matmul %17, %18, %cst_10 {dimension_numbers = #tpu.dot_dimension_numbers<[1], [0], [0], [1], [0, 0, 1, 1], [], []>} : vector<16x48xbf16>, vector<48x128xbf16>, vector<16x128xf32> -> vector<16x128xf32>
    %20 = arith.addf %16, %19 : vector<16x128xf32>
    %21 = vector.extract_strided_slice %5 {offsets = [64, 0], sizes = [16, 48], strides = [1, 1]} : vector<80x48xbf16> to vector<16x48xbf16>
    %22 = vector.extract_strided_slice %2 {offsets = [192, 0], sizes = [48, 128], strides = [1, 1]} : vector<240x128xbf16> to vector<48x128xbf16>
    %cst_11 = arith.constant dense<0.000000e+00> : vector<16x128xf32>
    %23 = tpu.matmul %21, %22, %cst_11 {dimension_numbers = #tpu.dot_dimension_numbers<[1], [0], [0], [1], [0, 0, 1, 1], [], []>} : vector<16x48xbf16>, vector<48x128xbf16>, vector<16x128xf32> -> vector<16x128xf32>
    %24 = arith.addf %20, %23 : vector<16x128xf32>
    %25 = vector.broadcast %3 : vector<1x128xf32> to vector<16x128xf32>
    %26 = arith.addf %24, %25 : vector<16x128xf32>
    %cst_12 = arith.constant 0.000000e+00 : f32
    %27 = vector.broadcast %cst_12 : f32 to vector<16x128xf32>
    %28 = arith.maximumf %26, %27 : vector<16x128xf32>
    %29 = arith.truncf %28 : vector<16x128xf32> to vector<16x128xbf16>
    %c0_13 = arith.constant 0 : index
    %c0_14 = arith.constant 0 : index
    %30 = vector.load %arg5[%c0_13, %c0_14] : memref<128x64xbf16, #tpu.memory_space<vmem>>, vector<128x64xbf16>
    %c0_15 = arith.constant 0 : index
    %c0_16 = arith.constant 0 : index
    %31 = vector.load %arg6[%c0_15, %c0_16] : memref<128x64xbf16, #tpu.memory_space<vmem>>, vector<128x64xbf16>
    %cst_17 = arith.constant dense<0.000000e+00> : vector<16x64xf32>
    %32 = tpu.matmul %29, %31, %cst_17 {dimension_numbers = #tpu.dot_dimension_numbers<[1], [0], [0], [1], [0, 0, 1, 1], [], []>} : vector<16x128xbf16>, vector<128x64xbf16>, vector<16x64xf32> -> vector<16x64xf32>
    %cst_18 = arith.constant dense<0.000000e+00> : vector<16x64xf32>
    %33 = tpu.matmul %29, %30, %cst_18 {dimension_numbers = #tpu.dot_dimension_numbers<[1], [0], [0], [1], [0, 0, 1, 1], [], []>} : vector<16x128xbf16>, vector<128x64xbf16>, vector<16x64xf32> -> vector<16x64xf32>
    %34 = arith.addf %33, %32 : vector<16x64xf32>
    %35 = arith.truncf %34 : vector<16x64xf32> to vector<16x64xbf16>
    %c0_19 = arith.constant 0 : index
    %c0_20 = arith.constant 0 : index
    %36 = vector.load %arg7[%c0_19, %c0_20] : memref<24x16xbf16, #tpu.memory_space<vmem>>, vector<24x16xbf16>
    %c0_21 = arith.constant 0 : index
    %c0_22 = arith.constant 0 : index
    %37 = vector.load %arg8[%c0_21, %c0_22] : memref<192x128xbf16, #tpu.memory_space<vmem>>, vector<192x128xbf16>
    %c0_23 = arith.constant 0 : index
    %c0_24 = arith.constant 0 : index
    %38 = vector.load %arg9[%c0_23, %c0_24] : memref<1x128xf32, #tpu.memory_space<vmem>>, vector<1x128xf32>
    %cst_25 = arith.constant dense<0.000000e+00> : vector<24x64xf32>
    %39 = tpu.matmul %36, %35, %cst_25 {dimension_numbers = #tpu.dot_dimension_numbers<[1], [0], [0], [1], [0, 0, 1, 1], [], []>} : vector<24x16xbf16>, vector<16x64xbf16>, vector<24x64xf32> -> vector<24x64xf32>
    %40 = arith.truncf %39 : vector<24x64xf32> to vector<24x64xbf16>
    %41 = vector.extract_strided_slice %40 {offsets = [0, 0], sizes = [8, 64], strides = [1, 1]} : vector<24x64xbf16> to vector<8x64xbf16>
    %42 = vector.extract_strided_slice %37 {offsets = [0, 0], sizes = [64, 128], strides = [1, 1]} : vector<192x128xbf16> to vector<64x128xbf16>
    %cst_26 = arith.constant dense<0.000000e+00> : vector<8x128xf32>
    %43 = tpu.matmul %41, %42, %cst_26 {dimension_numbers = #tpu.dot_dimension_numbers<[1], [0], [0], [1], [0, 0, 1, 1], [], []>} : vector<8x64xbf16>, vector<64x128xbf16>, vector<8x128xf32> -> vector<8x128xf32>
    %44 = vector.extract_strided_slice %40 {offsets = [8, 0], sizes = [8, 64], strides = [1, 1]} : vector<24x64xbf16> to vector<8x64xbf16>
    %45 = vector.extract_strided_slice %37 {offsets = [64, 0], sizes = [64, 128], strides = [1, 1]} : vector<192x128xbf16> to vector<64x128xbf16>
    %cst_27 = arith.constant dense<0.000000e+00> : vector<8x128xf32>
    %46 = tpu.matmul %44, %45, %cst_27 {dimension_numbers = #tpu.dot_dimension_numbers<[1], [0], [0], [1], [0, 0, 1, 1], [], []>} : vector<8x64xbf16>, vector<64x128xbf16>, vector<8x128xf32> -> vector<8x128xf32>
    %47 = arith.addf %43, %46 : vector<8x128xf32>
    %48 = vector.extract_strided_slice %40 {offsets = [16, 0], sizes = [8, 64], strides = [1, 1]} : vector<24x64xbf16> to vector<8x64xbf16>
    %49 = vector.extract_strided_slice %37 {offsets = [128, 0], sizes = [64, 128], strides = [1, 1]} : vector<192x128xbf16> to vector<64x128xbf16>
    %cst_28 = arith.constant dense<0.000000e+00> : vector<8x128xf32>
    %50 = tpu.matmul %48, %49, %cst_28 {dimension_numbers = #tpu.dot_dimension_numbers<[1], [0], [0], [1], [0, 0, 1, 1], [], []>} : vector<8x64xbf16>, vector<64x128xbf16>, vector<8x128xf32> -> vector<8x128xf32>
    %51 = arith.addf %47, %50 : vector<8x128xf32>
    %52 = vector.broadcast %38 : vector<1x128xf32> to vector<8x128xf32>
    %53 = arith.addf %51, %52 : vector<8x128xf32>
    %cst_29 = arith.constant 0.000000e+00 : f32
    %54 = vector.broadcast %cst_29 : f32 to vector<8x128xf32>
    %55 = arith.maximumf %53, %54 : vector<8x128xf32>
    %c0_30 = arith.constant 0 : index
    %c0_31 = arith.constant 0 : index
    %56 = vector.load %arg10[%c0_30, %c0_31] : memref<128x32xbf16, #tpu.memory_space<vmem>>, vector<128x32xbf16>
    %c0_32 = arith.constant 0 : index
    %c0_33 = arith.constant 0 : index
    %57 = vector.load %arg11[%c0_32, %c0_33] : memref<24x8xbf16, #tpu.memory_space<vmem>>, vector<24x8xbf16>
    %c0_34 = arith.constant 0 : index
    %c0_35 = arith.constant 0 : index
    %58 = vector.load %arg12[%c0_34, %c0_35] : memref<96x128xbf16, #tpu.memory_space<vmem>>, vector<96x128xbf16>
    %59 = arith.truncf %55 : vector<8x128xf32> to vector<8x128xbf16>
    %cst_36 = arith.constant dense<0.000000e+00> : vector<8x32xf32>
    %60 = tpu.matmul %59, %56, %cst_36 {dimension_numbers = #tpu.dot_dimension_numbers<[1], [0], [0], [1], [0, 0, 1, 1], [], []>} : vector<8x128xbf16>, vector<128x32xbf16>, vector<8x32xf32> -> vector<8x32xf32>
    %61 = arith.truncf %60 : vector<8x32xf32> to vector<8x32xbf16>
    %cst_37 = arith.constant dense<0.000000e+00> : vector<24x32xf32>
    %62 = tpu.matmul %57, %61, %cst_37 {dimension_numbers = #tpu.dot_dimension_numbers<[1], [0], [0], [1], [0, 0, 1, 1], [], []>} : vector<24x8xbf16>, vector<8x32xbf16>, vector<24x32xf32> -> vector<24x32xf32>
    %63 = arith.truncf %62 : vector<24x32xf32> to vector<24x32xbf16>
    %64 = vector.extract_strided_slice %63 {offsets = [0, 0], sizes = [8, 32], strides = [1, 1]} : vector<24x32xbf16> to vector<8x32xbf16>
    %65 = vector.extract_strided_slice %58 {offsets = [0, 0], sizes = [32, 128], strides = [1, 1]} : vector<96x128xbf16> to vector<32x128xbf16>
    %cst_38 = arith.constant dense<0.000000e+00> : vector<8x128xf32>
    %66 = tpu.matmul %64, %65, %cst_38 {dimension_numbers = #tpu.dot_dimension_numbers<[1], [0], [0], [1], [0, 0, 1, 1], [], []>} : vector<8x32xbf16>, vector<32x128xbf16>, vector<8x128xf32> -> vector<8x128xf32>
    %67 = vector.extract_strided_slice %63 {offsets = [8, 0], sizes = [8, 32], strides = [1, 1]} : vector<24x32xbf16> to vector<8x32xbf16>
    %68 = vector.extract_strided_slice %58 {offsets = [32, 0], sizes = [32, 128], strides = [1, 1]} : vector<96x128xbf16> to vector<32x128xbf16>
    %cst_39 = arith.constant dense<0.000000e+00> : vector<8x128xf32>
    %69 = tpu.matmul %67, %68, %cst_39 {dimension_numbers = #tpu.dot_dimension_numbers<[1], [0], [0], [1], [0, 0, 1, 1], [], []>} : vector<8x32xbf16>, vector<32x128xbf16>, vector<8x128xf32> -> vector<8x128xf32>
    %70 = arith.addf %66, %69 : vector<8x128xf32>
    %71 = vector.extract_strided_slice %63 {offsets = [16, 0], sizes = [8, 32], strides = [1, 1]} : vector<24x32xbf16> to vector<8x32xbf16>
    %72 = vector.extract_strided_slice %58 {offsets = [64, 0], sizes = [32, 128], strides = [1, 1]} : vector<96x128xbf16> to vector<32x128xbf16>
    %cst_40 = arith.constant dense<0.000000e+00> : vector<8x128xf32>
    %73 = tpu.matmul %71, %72, %cst_40 {dimension_numbers = #tpu.dot_dimension_numbers<[1], [0], [0], [1], [0, 0, 1, 1], [], []>} : vector<8x32xbf16>, vector<32x128xbf16>, vector<8x128xf32> -> vector<8x128xf32>
    %74 = arith.addf %70, %73 : vector<8x128xf32>
    %75 = arith.negf %74 : vector<8x128xf32>
    %76 = math.exp %75 : vector<8x128xf32>
    %cst_41 = arith.constant 1.000000e+00 : f32
    %77 = vector.broadcast %cst_41 : f32 to vector<8x128xf32>
    %78 = arith.addf %77, %76 : vector<8x128xf32>
    %79 = arith.divf %77, %78 : vector<8x128xf32>
    %80 = arith.mulf %55, %79 : vector<8x128xf32>
    %81 = arith.truncf %80 : vector<8x128xf32> to vector<8x128xbf16>
    %c0_42 = arith.constant 0 : index
    %c0_43 = arith.constant 0 : index
    %82 = vector.load %arg13[%c0_42, %c0_43] : memref<128x64xbf16, #tpu.memory_space<vmem>>, vector<128x64xbf16>
    %c0_44 = arith.constant 0 : index
    %c0_45 = arith.constant 0 : index
    %83 = vector.load %arg14[%c0_44, %c0_45] : memref<128x64xbf16, #tpu.memory_space<vmem>>, vector<128x64xbf16>
    %c0_46 = arith.constant 0 : index
    %c0_47 = arith.constant 0 : index
    %84 = vector.load %arg15[%c0_46, %c0_47] : memref<8x16xbf16, #tpu.memory_space<vmem>>, vector<8x16xbf16>
    %cst_48 = arith.constant dense<0.000000e+00> : vector<16x64xf32>
    %85 = tpu.matmul %29, %83, %cst_48 {dimension_numbers = #tpu.dot_dimension_numbers<[1], [0], [0], [1], [0, 0, 1, 1], [], []>} : vector<16x128xbf16>, vector<128x64xbf16>, vector<16x64xf32> -> vector<16x64xf32>
    %86 = arith.truncf %85 : vector<16x64xf32> to vector<16x64xbf16>
    %cst_49 = arith.constant dense<0.000000e+00> : vector<8x64xf32>
    %87 = tpu.matmul %84, %86, %cst_49 {dimension_numbers = #tpu.dot_dimension_numbers<[1], [0], [0], [1], [0, 0, 1, 1], [], []>} : vector<8x16xbf16>, vector<16x64xbf16>, vector<8x64xf32> -> vector<8x64xf32>
    %cst_50 = arith.constant dense<0.000000e+00> : vector<8x64xf32>
    %88 = tpu.matmul %81, %82, %cst_50 {dimension_numbers = #tpu.dot_dimension_numbers<[1], [0], [0], [1], [0, 0, 1, 1], [], []>} : vector<8x128xbf16>, vector<128x64xbf16>, vector<8x64xf32> -> vector<8x64xf32>
    %89 = arith.addf %88, %87 : vector<8x64xf32>
    %90 = arith.truncf %89 : vector<8x64xf32> to vector<8x64xbf16>
    %c0_51 = arith.constant 0 : index
    %c0_52 = arith.constant 0 : index
    %91 = vector.load %arg16[%c0_51, %c0_52] : memref<24x8xbf16, #tpu.memory_space<vmem>>, vector<24x8xbf16>
    %c0_53 = arith.constant 0 : index
    %c0_54 = arith.constant 0 : index
    %92 = vector.load %arg17[%c0_53, %c0_54] : memref<192x256xbf16, #tpu.memory_space<vmem>>, vector<192x256xbf16>
    %c0_55 = arith.constant 0 : index
    %c0_56 = arith.constant 0 : index
    %93 = vector.load %arg18[%c0_55, %c0_56] : memref<1x256xf32, #tpu.memory_space<vmem>>, vector<1x256xf32>
    %cst_57 = arith.constant dense<0.000000e+00> : vector<24x64xf32>
    %94 = tpu.matmul %91, %90, %cst_57 {dimension_numbers = #tpu.dot_dimension_numbers<[1], [0], [0], [1], [0, 0, 1, 1], [], []>} : vector<24x8xbf16>, vector<8x64xbf16>, vector<24x64xf32> -> vector<24x64xf32>
    %95 = arith.truncf %94 : vector<24x64xf32> to vector<24x64xbf16>
    %96 = vector.extract_strided_slice %95 {offsets = [0, 0], sizes = [8, 64], strides = [1, 1]} : vector<24x64xbf16> to vector<8x64xbf16>
    %97 = vector.extract_strided_slice %92 {offsets = [0, 0], sizes = [64, 256], strides = [1, 1]} : vector<192x256xbf16> to vector<64x256xbf16>
    %cst_58 = arith.constant dense<0.000000e+00> : vector<8x256xf32>
    %98 = tpu.matmul %96, %97, %cst_58 {dimension_numbers = #tpu.dot_dimension_numbers<[1], [0], [0], [1], [0, 0, 1, 1], [], []>} : vector<8x64xbf16>, vector<64x256xbf16>, vector<8x256xf32> -> vector<8x256xf32>
    %99 = vector.extract_strided_slice %95 {offsets = [8, 0], sizes = [8, 64], strides = [1, 1]} : vector<24x64xbf16> to vector<8x64xbf16>
    %100 = vector.extract_strided_slice %92 {offsets = [64, 0], sizes = [64, 256], strides = [1, 1]} : vector<192x256xbf16> to vector<64x256xbf16>
    %cst_59 = arith.constant dense<0.000000e+00> : vector<8x256xf32>
    %101 = tpu.matmul %99, %100, %cst_59 {dimension_numbers = #tpu.dot_dimension_numbers<[1], [0], [0], [1], [0, 0, 1, 1], [], []>} : vector<8x64xbf16>, vector<64x256xbf16>, vector<8x256xf32> -> vector<8x256xf32>
    %102 = arith.addf %98, %101 : vector<8x256xf32>
    %103 = vector.extract_strided_slice %95 {offsets = [16, 0], sizes = [8, 64], strides = [1, 1]} : vector<24x64xbf16> to vector<8x64xbf16>
    %104 = vector.extract_strided_slice %92 {offsets = [128, 0], sizes = [64, 256], strides = [1, 1]} : vector<192x256xbf16> to vector<64x256xbf16>
    %cst_60 = arith.constant dense<0.000000e+00> : vector<8x256xf32>
    %105 = tpu.matmul %103, %104, %cst_60 {dimension_numbers = #tpu.dot_dimension_numbers<[1], [0], [0], [1], [0, 0, 1, 1], [], []>} : vector<8x64xbf16>, vector<64x256xbf16>, vector<8x256xf32> -> vector<8x256xf32>
    %106 = arith.addf %102, %105 : vector<8x256xf32>
    %107 = vector.broadcast %93 : vector<1x256xf32> to vector<8x256xf32>
    %108 = arith.addf %106, %107 : vector<8x256xf32>
    %cst_61 = arith.constant 0.000000e+00 : f32
    %109 = vector.broadcast %cst_61 : f32 to vector<8x256xf32>
    %110 = arith.maximumf %108, %109 : vector<8x256xf32>
    %c0_62 = arith.constant 0 : index
    %c0_63 = arith.constant 0 : index
    %111 = vector.load %arg19[%c0_62, %c0_63] : memref<256x64xbf16, #tpu.memory_space<vmem>>, vector<256x64xbf16>
    %c0_64 = arith.constant 0 : index
    %c0_65 = arith.constant 0 : index
    %112 = vector.load %arg20[%c0_64, %c0_65] : memref<24x8xbf16, #tpu.memory_space<vmem>>, vector<24x8xbf16>
    %c0_66 = arith.constant 0 : index
    %c0_67 = arith.constant 0 : index
    %113 = vector.load %arg21[%c0_66, %c0_67] : memref<192x256xbf16, #tpu.memory_space<vmem>>, vector<192x256xbf16>
    %114 = arith.truncf %110 : vector<8x256xf32> to vector<8x256xbf16>
    %cst_68 = arith.constant dense<0.000000e+00> : vector<8x64xf32>
    %115 = tpu.matmul %114, %111, %cst_68 {dimension_numbers = #tpu.dot_dimension_numbers<[1], [0], [0], [1], [0, 0, 1, 1], [], []>} : vector<8x256xbf16>, vector<256x64xbf16>, vector<8x64xf32> -> vector<8x64xf32>
    %116 = arith.truncf %115 : vector<8x64xf32> to vector<8x64xbf16>
    %cst_69 = arith.constant dense<0.000000e+00> : vector<24x64xf32>
    %117 = tpu.matmul %112, %116, %cst_69 {dimension_numbers = #tpu.dot_dimension_numbers<[1], [0], [0], [1], [0, 0, 1, 1], [], []>} : vector<24x8xbf16>, vector<8x64xbf16>, vector<24x64xf32> -> vector<24x64xf32>
    %118 = arith.truncf %117 : vector<24x64xf32> to vector<24x64xbf16>
    %119 = vector.extract_strided_slice %118 {offsets = [0, 0], sizes = [8, 64], strides = [1, 1]} : vector<24x64xbf16> to vector<8x64xbf16>
    %120 = vector.extract_strided_slice %113 {offsets = [0, 0], sizes = [64, 256], strides = [1, 1]} : vector<192x256xbf16> to vector<64x256xbf16>
    %cst_70 = arith.constant dense<0.000000e+00> : vector<8x256xf32>
    %121 = tpu.matmul %119, %120, %cst_70 {dimension_numbers = #tpu.dot_dimension_numbers<[1], [0], [0], [1], [0, 0, 1, 1], [], []>} : vector<8x64xbf16>, vector<64x256xbf16>, vector<8x256xf32> -> vector<8x256xf32>
    %122 = vector.extract_strided_slice %118 {offsets = [8, 0], sizes = [8, 64], strides = [1, 1]} : vector<24x64xbf16> to vector<8x64xbf16>
    %123 = vector.extract_strided_slice %113 {offsets = [64, 0], sizes = [64, 256], strides = [1, 1]} : vector<192x256xbf16> to vector<64x256xbf16>
    %cst_71 = arith.constant dense<0.000000e+00> : vector<8x256xf32>
    %124 = tpu.matmul %122, %123, %cst_71 {dimension_numbers = #tpu.dot_dimension_numbers<[1], [0], [0], [1], [0, 0, 1, 1], [], []>} : vector<8x64xbf16>, vector<64x256xbf16>, vector<8x256xf32> -> vector<8x256xf32>
    %125 = arith.addf %121, %124 : vector<8x256xf32>
    %126 = vector.extract_strided_slice %118 {offsets = [16, 0], sizes = [8, 64], strides = [1, 1]} : vector<24x64xbf16> to vector<8x64xbf16>
    %127 = vector.extract_strided_slice %113 {offsets = [128, 0], sizes = [64, 256], strides = [1, 1]} : vector<192x256xbf16> to vector<64x256xbf16>
    %cst_72 = arith.constant dense<0.000000e+00> : vector<8x256xf32>
    %128 = tpu.matmul %126, %127, %cst_72 {dimension_numbers = #tpu.dot_dimension_numbers<[1], [0], [0], [1], [0, 0, 1, 1], [], []>} : vector<8x64xbf16>, vector<64x256xbf16>, vector<8x256xf32> -> vector<8x256xf32>
    %129 = arith.addf %125, %128 : vector<8x256xf32>
    %130 = arith.negf %129 : vector<8x256xf32>
    %131 = math.exp %130 : vector<8x256xf32>
    %cst_73 = arith.constant 1.000000e+00 : f32
    %132 = vector.broadcast %cst_73 : f32 to vector<8x256xf32>
    %133 = arith.addf %132, %131 : vector<8x256xf32>
    %134 = arith.divf %132, %133 : vector<8x256xf32>
    %135 = arith.mulf %110, %134 : vector<8x256xf32>
    %136 = arith.truncf %135 : vector<8x256xf32> to vector<8x256xbf16>
    %c0_74 = arith.constant 0 : index
    %c0_75 = arith.constant 0 : index
    %137 = vector.load %arg22[%c0_74, %c0_75] : memref<256x128xbf16, #tpu.memory_space<vmem>>, vector<256x128xbf16>
    %c0_76 = arith.constant 0 : index
    %c0_77 = arith.constant 0 : index
    %138 = vector.load %arg23[%c0_76, %c0_77] : memref<1x128xf32, #tpu.memory_space<vmem>>, vector<1x128xf32>
    %139 = arith.extf %136 : vector<8x256xbf16> to vector<8x256xf32>
    %cst_78 = arith.constant dense<0.000000e+00> : vector<256xf32>
    %140 = vector.multi_reduction <add>, %139, %cst_78 [0] : vector<8x256xf32> to vector<256xf32>
    %141 = vector.shape_cast %140 : vector<256xf32> to vector<1x256xf32>
    %cst_79 = arith.constant 8.000000e+00 : f32
    %142 = vector.broadcast %cst_79 : f32 to vector<1x256xf32>
    %143 = arith.divf %141, %142 : vector<1x256xf32>
    %144 = arith.truncf %143 : vector<1x256xf32> to vector<1x256xbf16>
    %cst_80 = arith.constant dense<0.000000e+00> : vector<1x128xf32>
    %145 = tpu.matmul %144, %137, %cst_80 {dimension_numbers = #tpu.dot_dimension_numbers<[1], [0], [0], [1], [0, 0, 1, 1], [], []>} : vector<1x256xbf16>, vector<256x128xbf16>, vector<1x128xf32> -> vector<1x128xf32>
    %146 = arith.addf %145, %138 : vector<1x128xf32>
    %147 = vector.shape_cast %146 : vector<1x128xf32> to vector<1x128xf32>
    %148 = vector.broadcast %147 : vector<1x128xf32> to vector<8x128xf32>
    %c0_81 = arith.constant 0 : index
    %c0_82 = arith.constant 0 : index
    %149 = vector.load %arg24[%c0_81, %c0_82] : memref<8x128xf32, #tpu.memory_space<vmem>>, vector<8x128xf32>
    tpu.vector_store %arg24[%c0_81, %c0_82], %148 {strides = array<i32>} : memref<8x128xf32, #tpu.memory_space<vmem>>, vector<8x128xf32>,
    return
  }
  func.func @transform_0(%arg0: i32) -> (i32, i32) {
    %c0_i32 = arith.constant 0 : i32
    %c0_i32_0 = arith.constant 0 : i32
    return %arg0, %c0_i32 : i32, i32
  }
  func.func @transform_1(%arg0: i32) -> (i32, i32) {
    %c0_i32 = arith.constant 0 : i32
    %c0_i32_0 = arith.constant 0 : i32
    %c0_i32_1 = arith.constant 0 : i32
    return %c0_i32, %c0_i32_0 : i32, i32
  }
  func.func @transform_2(%arg0: i32) -> (i32, i32) {
    %c0_i32 = arith.constant 0 : i32
    %c0_i32_0 = arith.constant 0 : i32
    %c0_i32_1 = arith.constant 0 : i32
    return %c0_i32, %c0_i32_0 : i32, i32
  }
  func.func @transform_3(%arg0: i32) -> (i32, i32) {
    %c0_i32 = arith.constant 0 : i32
    %c0_i32_0 = arith.constant 0 : i32
    %c0_i32_1 = arith.constant 0 : i32
    return %c0_i32, %c0_i32_0 : i32, i32
  }
  func.func @transform_4(%arg0: i32) -> (i32, i32) {
    %c0_i32 = arith.constant 0 : i32
    %c0_i32_0 = arith.constant 0 : i32
    %c0_i32_1 = arith.constant 0 : i32
    return %c0_i32, %c0_i32_0 : i32, i32
  }
  func.func @transform_5(%arg0: i32) -> (i32, i32) {
    %c0_i32 = arith.constant 0 : i32
    %c0_i32_0 = arith.constant 0 : i32
    %c0_i32_1 = arith.constant 0 : i32
    return %c0_i32, %c0_i32_0 : i32, i32
  }
  func.func @transform_6(%arg0: i32) -> (i32, i32) {
    %c0_i32 = arith.constant 0 : i32
    %c0_i32_0 = arith.constant 0 : i32
    %c0_i32_1 = arith.constant 0 : i32
    return %c0_i32, %c0_i32_0 : i32, i32
  }
  func.func @transform_7(%arg0: i32) -> (i32, i32) {
    %c0_i32 = arith.constant 0 : i32
    %c0_i32_0 = arith.constant 0 : i32
    %c0_i32_1 = arith.constant 0 : i32
    return %c0_i32, %c0_i32_0 : i32, i32
  }
  func.func @transform_8(%arg0: i32) -> (i32, i32) {
    %c0_i32 = arith.constant 0 : i32
    %c0_i32_0 = arith.constant 0 : i32
    %c0_i32_1 = arith.constant 0 : i32
    return %c0_i32, %c0_i32_0 : i32, i32
  }
  func.func @transform_9(%arg0: i32) -> (i32, i32) {
    %c0_i32 = arith.constant 0 : i32
    %c0_i32_0 = arith.constant 0 : i32
    %c0_i32_1 = arith.constant 0 : i32
    return %c0_i32, %c0_i32_0 : i32, i32
  }
  func.func @transform_10(%arg0: i32) -> (i32, i32) {
    %c0_i32 = arith.constant 0 : i32
    %c0_i32_0 = arith.constant 0 : i32
    %c0_i32_1 = arith.constant 0 : i32
    return %c0_i32, %c0_i32_0 : i32, i32
  }
  func.func @transform_11(%arg0: i32) -> (i32, i32) {
    %c0_i32 = arith.constant 0 : i32
    %c0_i32_0 = arith.constant 0 : i32
    %c0_i32_1 = arith.constant 0 : i32
    return %c0_i32, %c0_i32_0 : i32, i32
  }
  func.func @transform_12(%arg0: i32) -> (i32, i32) {
    %c0_i32 = arith.constant 0 : i32
    %c0_i32_0 = arith.constant 0 : i32
    %c0_i32_1 = arith.constant 0 : i32
    return %c0_i32, %c0_i32_0 : i32, i32
  }
  func.func @transform_13(%arg0: i32) -> (i32, i32) {
    %c0_i32 = arith.constant 0 : i32
    %c0_i32_0 = arith.constant 0 : i32
    %c0_i32_1 = arith.constant 0 : i32
    return %c0_i32, %c0_i32_0 : i32, i32
  }
  func.func @transform_14(%arg0: i32) -> (i32, i32) {
    %c0_i32 = arith.constant 0 : i32
    %c0_i32_0 = arith.constant 0 : i32
    %c0_i32_1 = arith.constant 0 : i32
    return %c0_i32, %c0_i32_0 : i32, i32
  }
  func.func @transform_15(%arg0: i32) -> (i32, i32) {
    %c0_i32 = arith.constant 0 : i32
    %c0_i32_0 = arith.constant 0 : i32
    %c0_i32_1 = arith.constant 0 : i32
    return %c0_i32, %c0_i32_0 : i32, i32
  }
  func.func @transform_16(%arg0: i32) -> (i32, i32) {
    %c0_i32 = arith.constant 0 : i32
    %c0_i32_0 = arith.constant 0 : i32
    %c0_i32_1 = arith.constant 0 : i32
    return %c0_i32, %c0_i32_0 : i32, i32
  }
  func.func @transform_17(%arg0: i32) -> (i32, i32) {
    %c0_i32 = arith.constant 0 : i32
    %c0_i32_0 = arith.constant 0 : i32
    %c0_i32_1 = arith.constant 0 : i32
    return %c0_i32, %c0_i32_0 : i32, i32
  }
  func.func @transform_18(%arg0: i32) -> (i32, i32) {
    %c0_i32 = arith.constant 0 : i32
    %c0_i32_0 = arith.constant 0 : i32
    %c0_i32_1 = arith.constant 0 : i32
    return %c0_i32, %c0_i32_0 : i32, i32
  }
  func.func @transform_19(%arg0: i32) -> (i32, i32) {
    %c0_i32 = arith.constant 0 : i32
    %c0_i32_0 = arith.constant 0 : i32
    %c0_i32_1 = arith.constant 0 : i32
    return %c0_i32, %c0_i32_0 : i32, i32
  }
  func.func @transform_20(%arg0: i32) -> (i32, i32) {
    %c0_i32 = arith.constant 0 : i32
    %c0_i32_0 = arith.constant 0 : i32
    %c0_i32_1 = arith.constant 0 : i32
    return %c0_i32, %c0_i32_0 : i32, i32
  }
  func.func @transform_21(%arg0: i32) -> (i32, i32) {
    %c0_i32 = arith.constant 0 : i32
    %c0_i32_0 = arith.constant 0 : i32
    %c0_i32_1 = arith.constant 0 : i32
    return %c0_i32, %c0_i32_0 : i32, i32
  }
  func.func @transform_22(%arg0: i32) -> (i32, i32) {
    %c0_i32 = arith.constant 0 : i32
    %c0_i32_0 = arith.constant 0 : i32
    %c0_i32_1 = arith.constant 0 : i32
    return %c0_i32, %c0_i32_0 : i32, i32
  }
  func.func @transform_23(%arg0: i32) -> (i32, i32) {
    %c0_i32 = arith.constant 0 : i32
    %c0_i32_0 = arith.constant 0 : i32
    return %arg0, %c0_i32 : i32, i32
  }
}

</mosaic_0001>

<bundles_post_ra>
// kernel: _lambda_.1
= control target key start
LH: loop header
LB: loop body
LE: loop exit
PB: predicated region body
PF: predicated region fallthrough
CT: control target
= control target key end

     0   :  { %s5370_s0 = inlined_call_operand.vmem [shape: bf16[32,48], index: 0, kind: input, shape index: {}]   ;;  %s5371_s1 = inlined_call_operand.vmem [shape: bf16[80,16], index: 1, kind: input, shape index: {}]   ;;  %s5372_s2 = inlined_call_operand.hbm [shape: bf16[240,128], index: 2, kind: input, shape index: {}]   ;;  %s5373_s3 = inlined_call_operand.vmem [shape: f32[1,128], index: 3, kind: input, shape index: {}, may-alias: {3,8}]   ;;  %s5374_s4 = inlined_call_operand.hbm [shape: bf16[128,64], index: 4, kind: input, shape index: {}]   ;;  %s5375_s5 = inlined_call_operand.hbm [shape: bf16[128,64], index: 5, kind: input, shape index: {}]   ;;  %s5376_s6 = inlined_call_operand.hbm [shape: bf16[24,16], index: 6, kind: input, shape index: {}]   ;;  %s5377_s7 = inlined_call_operand.hbm [shape: bf16[192,128], index: 7, kind: input, shape index: {}]   ;;  %s5378_s8 = inlined_call_operand.vmem [shape: f32[1,128], index: 8, kind: input, shape index: {}, may-alias: {3,8}]   ;;  %s5379_s9 = inlined_call_operand.hbm [shape: bf16[128,32], index: 9, kind: input, shape index: {}]   ;;  %s5380_s10 = inlined_call_operand.hbm [shape: bf16[24,8], index: 10, kind: input, shape index: {}, may-alias: {10,15,19}]   ;;  %s5381_s11 = inlined_call_operand.hbm [shape: bf16[96,128], index: 11, kind: input, shape index: {}]   ;;  %s5382_s12 = inlined_call_operand.hbm [shape: bf16[128,64], index: 12, kind: input, shape index: {}]   ;;  %s5383_s13 = inlined_call_operand.hbm [shape: bf16[128,64], index: 13, kind: input, shape index: {}]   ;;  %s5384_s14 = inlined_call_operand.hbm [shape: bf16[8,16], index: 14, kind: input, shape index: {}]   ;;  %s5385_s15 = inlined_call_operand.hbm [shape: bf16[24,8], index: 15, kind: input, shape index: {}, may-alias: {10,15,19}]   ;;  %s5386_s16 = inlined_call_operand.vmem [shape: bf16[192,256], index: 16, kind: input, shape index: {}]   ;;  %s5387_s17 = inlined_call_operand.vmem [shape: f32[1,256], index: 17, kind: input, shape index: {}]   ;;  %s5388_s18 = inlined_call_operand.vmem [shape: bf16[256,64], index: 18, kind: input, shape index: {}]   ;;  %s5389_s19 = inlined_call_operand.hbm [shape: bf16[24,8], index: 19, kind: input, shape index: {}, may-alias: {10,15,19}]   ;;  %s5390_s20 = inlined_call_operand.hbm [shape: bf16[192,256], index: 20, kind: input, shape index: {}]   ;;  %s5391_s21 = inlined_call_operand.hbm [shape: bf16[256,128], index: 21, kind: input, shape index: {}]   ;;  %s5392_s22 = inlined_call_operand.vmem [shape: f32[1,128], index: 22, kind: input, shape index: {}]   ;;  %s5393_s23 = inlined_call_operand.vmem [shape: f32[16,128], index: 23, kind: output, shape index: {}]  }
   0x1   :  { %5396 = sst [smem:[#allocation34_spill]] %s5370_s0 }
   0x2   :  { %5397 = sst [smem:[#allocation35_spill]] %s5371_s1 }
   0x3   :  { %5398 = sst [smem:[#allocation36_spill]] %s5372_s2 }
   0x4   :  { %5399 = sst [smem:[#allocation37_spill]] %s5373_s3 }
   0x5   :  { %5400 = sst [smem:[#allocation38_spill]] %s5374_s4 }
   0x6   :  { %5401 = sst [smem:[#allocation39_spill]] %s5375_s5 }
   0x7   :  { %5402 = sst [smem:[#allocation40_spill]] %s5376_s6 }
   0x8   :  { %5403 = sst [smem:[#allocation41_spill]] %s5377_s7 }
   0x9   :  { %5404 = sst [smem:[#allocation42_spill]] %s5379_s9 }
   0xa   :  { %5405 = sst [smem:[#allocation43_spill]] %s5381_s11 }
   0xb   :  { %5406 = sst [smem:[#allocation44_spill]] %s5383_s13 }
   0xc   :  { %5407 = sst [smem:[#allocation45_spill]] %s5385_s15 }
   0xd   :  { %5408 = sst [smem:[#allocation46_spill]] %s5390_s20 }
   0xe   :  { %28 = vsyncpa [#allocation3], 0 }
   0xf   :  { %29 = vsyncpa [#allocation5], 0 }
  0x10   :  { %30 = vsyncpa [#allocation8], 0 }
  0x11   :  { %31 = vsyncpa [#allocation11], 0 }
  0x12   :  { %32 = vsyncpa [#allocation14], 0 }
  0x13   :  { %33 = vsyncpa [#allocation17], 0 }
  0x14   :  { %34 = vsyncpa [#allocation20], 0 }
  0x15   :  { %35 = vsyncpa [#allocation23], 0  ;;  %s4911_s4 = smov 0  }
  0x16 LB: > { %5409 = sst [smem:[#allocation33_spill]] %s4769_s4  ;;  %s4917_s30 = sadd.s32 4294967295, %s4769_s4   ;;  %s4769_s4 = sphi %s4911_s4, %s41_s4  }
  0x17   : > { %p3208_p0 = scmp.ge.s32.totalorder %s4769_s4, 1  ;;  %p560_p1 = scmp.lt.s32.totalorder %s4769_s4, 3 }
  0x18   : > { %p4207_p2 = scmp.eq.s32.totalorder %s4917_s30, 0  ;;  %s5410_s5 = sld [smem:[#allocation38_spill]] }
  0x19   : > { %p4925_p3 = pnand %p3208_p0, %p560_p1  ;;  %s5412_s27 = sld [smem:[#allocation40_spill]] }
  0x1a   : > { %s4771_s28 = smov [#allocation4]   ;;  %s4772_s0 = smov [#allocation7]  }
  0x1b   : > { %p4161_p4 = pneg %p4925_p3  ;;  %s593_s29 = sshll.u32 %s4771_s28, 4  ;;  %s594_s29 = int_to_ptr.vmem [resolvable:$true] %s593_s29 }
  0x1c   : > { %s621_s24 = sshll.u32 %s4772_s0, 4  ;;  %s5414_s9 = sld [smem:[#allocation42_spill]]  ;;  %s622_s24 = int_to_ptr.vmem [resolvable:$true] %s621_s24 }
  0x1d   : > { %p4936_p5 = pnand %p4207_p2, %p4161_p4  ;;  %s4773_s6 = smov 64  }
  0x1e   : > { %s591_s1 = sshll.u32 %s5410_s5, 4  ;;  %s4775_s28 = smov [#allocation10]   ;;  %s592_s1 = int_to_ptr.hbm [resolvable:$true] %s591_s1 }
  0x1f   : > { %s619_s7 = sshll.u32 %s5412_s27, 4  ;;  %s4774_s27 = smov 4   ;;  %s620_s7 = int_to_ptr.hbm [resolvable:$true] %s619_s7 }
  0x20   : > { %4167 = dma.hbm_to_vmem [thread:$0]  (!%p4936_p5), %s592_s1, 1024, %s594_s29, [#allocation5], %s4773_s6, %s4773_s6, %s4774_s27  }
  0x21   : > { %4173 = dma.hbm_to_vmem [thread:$0]  (!%p4936_p5), %s620_s7, 192, %s622_s24, [#allocation8], %s4773_s6, %s4773_s6, %s4774_s27  }
  0x22   : > { %s650_s2 = sshll.u32 %s5414_s9, 4  ;;  %s652_s0 = sshll.u32 %s4775_s28, 4  ;;  %s651_s2 = int_to_ptr.hbm [resolvable:$true] %s650_s2  ;;  %s653_s0 = int_to_ptr.vmem [resolvable:$true] %s652_s0 }
  0x23   : > { %s5415_s11 = sld [smem:[#allocation43_spill]]  ;;  %s4776_s7 = smov [#allocation13]  }
  0x24   : > { %4179 = dma.hbm_to_vmem [thread:$0]  (!%p4936_p5), %s651_s2, 1024, %s653_s0, [#allocation11], %s4773_s6, %s4773_s6, %s4774_s27  }
  0x25   : > { %s5416_s13 = sld [smem:[#allocation44_spill]]  ;;  %s680_s24 = sshll.u32 %s4776_s7, 4  ;;  %s681_s24 = int_to_ptr.vmem [resolvable:$true] %s680_s24 }
  0x26   : > { %s4777_s4 = smov [#allocation16]   ;;  %s5417_s15 = sld [smem:[#allocation45_spill]] }
  0x27   : > { %s708_s28 = sshll.u32 %s4777_s4, 4  ;;  %s5418_s20 = sld [smem:[#allocation46_spill]]  ;;  %s709_s28 = int_to_ptr.vmem [resolvable:$true] %s708_s28 }
  0x28   : > { %s4778_s7 = smov [#allocation19]   ;;  %s4780_s4 = smov 128  }
  0x29   : > { %s678_s5 = sshll.u32 %s5415_s11, 4  ;;  %s4779_s11 = smov [#allocation22]   ;;  %s679_s5 = int_to_ptr.hbm [resolvable:$true] %s678_s5 }
  0x2a   : > { %4185 = dma.hbm_to_vmem [thread:$0]  (!%p4936_p5), %s679_s5, 768, %s681_s24, [#allocation14], %s4773_s6, %s4773_s6, %s4774_s27  }
  0x2b   : > { %s706_s9 = sshll.u32 %s5416_s13, 4  ;;  %s734_s5 = sshll.u32 %s4778_s7, 4  ;;  %s707_s9 = int_to_ptr.hbm [resolvable:$true] %s706_s9  ;;  %s735_s5 = int_to_ptr.vmem [resolvable:$true] %s734_s5 }
  0x2c   : > { %s732_s2 = sshll.u32 %s5417_s15, 4  ;;  %s771_s24 = sshll.u32 %s4779_s11, 4  ;;  %s733_s2 = int_to_ptr.hbm [resolvable:$true] %s732_s2  ;;  %s772_s24 = int_to_ptr.vmem [resolvable:$true] %s771_s24 }
  0x2d   : > { %4191 = dma.hbm_to_vmem [thread:$0]  (!%p4936_p5), %s707_s9, 1024, %s709_s28, [#allocation17], %s4773_s6, %s4773_s6, %s4774_s27  }
  0x2e   : > { %s769_s29 = sshll.u32 %s5418_s20, 4  ;;  %s4781_s9 = smov 8   ;;  %s770_s29 = int_to_ptr.hbm [resolvable:$true] %s769_s29 }
  0x2f   : > { %4197 = dma.hbm_to_vmem [thread:$0]  (!%p4936_p5), %s733_s2, 192, %s735_s5, [#allocation20], %s4773_s6, %s4773_s6, %s4774_s27  }
  0x30   : > { %4203 = dma.hbm_to_vmem [thread:$0]  (!%p4936_p5), %s770_s29, 3072, %s772_s24, [#allocation23], %s4780_s4, %s4780_s4, %s4781_s9  }
  0x31   : > { %s5419_s0 = sld [smem:[#allocation36_spill]]  ;;  %s4782_s7 = smov [#allocation2]  }
  0x32   : > { %s576_s13 = sshll.u32 %s4782_s7, 4  ;;  %s5420_s2 = sld [smem:[#allocation39_spill]]  ;;  %s577_s13 = int_to_ptr.vmem [resolvable:$true] %s576_s13 }
  0x33   : > { %s4783_s29 = smov [#allocation6]   ;;  %s5421_s9 = sld [smem:[#allocation41_spill]] }
  0x34   : > { %s607_s11 = sshll.u32 %s4783_s29, 4  ;;  %s664_s25 = sshll.u32 %s5380_s10, 4  ;;  %s608_s11 = int_to_ptr.vmem [resolvable:$true] %s607_s11  ;;  %s665_s25 = int_to_ptr.hbm [resolvable:$true] %s664_s25 }
  0x35   : > { %s721_s4 = sshll.u32 %s5384_s14, 4  ;;  %s4787_s15 = smov [#allocation18]   ;;  %s722_s4 = int_to_ptr.hbm [resolvable:$true] %s721_s4 }
  0x36   : > { %s723_s20 = sshll.u32 %s4787_s15, 4  ;;  %s4788_s29 = smov [#allocation21]   ;;  %s724_s20 = int_to_ptr.vmem [resolvable:$true] %s723_s20 }
  0x37   : > { %s574_s1 = sshll.u32 %s5419_s0, 4  ;;  %s575_s1 = int_to_ptr.hbm [resolvable:$true] %s574_s1 }
  0x38   : > { %s605_s5 = sshll.u32 %s5420_s2, 4  ;;  %s783_s2 = sshll.u32 %s5391_s21, 4  ;;  %s606_s5 = int_to_ptr.hbm [resolvable:$true] %s605_s5  ;;  %s784_s2 = int_to_ptr.hbm [resolvable:$true] %s783_s2 }
  0x39   : > { %4164 = dma.hbm_to_vmem [thread:$0]  (!%p4936_p5), %s575_s1, 1920, %s577_s13, [#allocation3], %s4773_s6, %s4773_s6, %s4774_s27  }
  0x3a   : > { %s633_s28 = sshll.u32 %s5421_s9, 4  ;;  %s4784_s13 = smov [#allocation9]   ;;  %s634_s28 = int_to_ptr.hbm [resolvable:$true] %s633_s28 }
  0x3b   : > { %4170 = dma.hbm_to_vmem [thread:$0]  (!%p4936_p5), %s606_s5, 1024, %s608_s11, [#allocation5], %s4773_s6, %s4773_s6, %s4774_s27  }
  0x3c   : > { %s635_s0 = sshll.u32 %s4784_s13, 4  ;;  %s4785_s1 = smov [#allocation12]   ;;  %s636_s0 = int_to_ptr.vmem [resolvable:$true] %s635_s0 }
  0x3d   : > { %4176 = dma.hbm_to_vmem [thread:$0]  (!%p4936_p5), %s634_s28, 1536, %s636_s0, [#allocation8], %s4773_s6, %s4773_s6, %s4774_s27  }
  0x3e   : > { %s666_s7 = sshll.u32 %s4785_s1, 4  ;;  %s692_s5 = sshll.u32 %s5382_s12, 4  ;;  %s667_s7 = int_to_ptr.vmem [resolvable:$true] %s666_s7  ;;  %s693_s5 = int_to_ptr.hbm [resolvable:$true] %s692_s5 }
  0x3f   : > { %4182 = dma.hbm_to_vmem [thread:$0]  (!%p4936_p5), %s665_s25, 192, %s667_s7, [#allocation11], %s4773_s6, %s4773_s6, %s4774_s27  }
  0x40   : > { %s4786_s9 = smov [#allocation15]   ;;  %s755_s25 = sshll.u32 %s5389_s19, 4  ;;  %s756_s25 = int_to_ptr.hbm [resolvable:$true] %s755_s25 }
  0x41   : > { %s694_s28 = sshll.u32 %s4786_s9, 4  ;;  %s757_s11 = sshll.u32 %s4788_s29, 4  ;;  %s695_s28 = int_to_ptr.vmem [resolvable:$true] %s694_s28  ;;  %s758_s11 = int_to_ptr.vmem [resolvable:$true] %s757_s11 }
  0x42   : > { %4188 = dma.hbm_to_vmem [thread:$0]  (!%p4936_p5), %s693_s5, 1024, %s695_s28, [#allocation14], %s4773_s6, %s4773_s6, %s4774_s27  }
  0x43   : > { %4194 = dma.hbm_to_vmem [thread:$0]  (!%p4936_p5), %s722_s4, 64, %s724_s20, [#allocation17]  }
  0x44   : > { %4200 = dma.hbm_to_vmem [thread:$0]  (!%p4936_p5), %s756_s25, 192, %s758_s11, [#allocation20], %s4773_s6, %s4773_s6, %s4774_s27  }
  0x45   : > { %s4789_s5 = smov [#allocation24]   ;;  %813 = sbr.rel (%p4925_p3) target bundleno = 2389 (0x955), region = 112 }
  0x46   : > { %s785_s24 = sshll.u32 %s4789_s5, 4  ;;  %s786_s24 = int_to_ptr.vmem [resolvable:$true] %s785_s24 }
  0x47   : > { %4206 = dma.hbm_to_vmem [thread:$0]  (!%p4936_p5), %s784_s2, 2048, %s786_s24, [#allocation23], %s4773_s6, %s4773_s6, %s4774_s27  }
  0x4a   : > { %4736 = dma.done.wait (%p4207_p2), [#allocation3], 1920  }
  0x4b   : > { %4738 = vsyncadd (%p4207_p2), [#allocation3], 4294965376 }
  0x4c   : > { %4740 = dma.done.wait (%p4207_p2), [#allocation5], 2048  }
  0x4d   : > { %4742 = vsyncadd (%p4207_p2), [#allocation5], 4294965248 }
  0x4e   : > { %4744 = dma.done.wait (%p4207_p2), [#allocation8], 1728  }
  0x4f   : > { %4746 = vsyncadd (%p4207_p2), [#allocation8], 4294965568 }
  0x50   : > { %4748 = dma.done.wait (%p4207_p2), [#allocation11], 1216  }
  0x51   : > { %4750 = vsyncadd (%p4207_p2), [#allocation11], 4294966080 }
  0x52   : > { %4752 = dma.done.wait (%p4207_p2), [#allocation14], 1792  }
  0x53   : > { %4754 = vsyncadd (%p4207_p2), [#allocation14], 4294965504 }
  0x54   : > { %4756 = dma.done.wait (%p4207_p2), [#allocation17], 1088  }
  0x55   : > { %4758 = vsyncadd (%p4207_p2), [#allocation17], 4294966208 }
  0x56   : > { %4760 = dma.done.wait (%p4207_p2), [#allocation20], 384  }
  0x57   : > { %4762 = vsyncadd (%p4207_p2), [#allocation20], 4294966912 }
  0x58   : > { %4764 = dma.done.wait (%p4207_p2), [#allocation23], 5120  }
  0x59   : > { %4766 = vsyncadd (%p4207_p2), [#allocation23], 4294962176  ;;  %s3241_s26 = sshll.u32 %s4917_s30, 1  ;;  %s5422_s4 = sld [smem:[#allocation34_spill]]  ;;  %vm1032_vm0 = vcmask 130048   ;;  %v3946_v6 = vld [vmem:[#allocation2 + $0x10] sm:$0xff] }
  0x5a   : > { %p948_p6 = scmp.lt.s32.totalorder %s3241_s26, 3  ;;  %s5423_s20 = sld [smem:[#allocation35_spill]]  ;;  %1164 = vmatpush.bf16.msra.mxu2 %v3946_v6  ;;  %v3945_v7 = vld [vmem:[#allocation2 + $0x8] sm:$0xff]  ;;  %v3944_v8 = vld [vmem:[#allocation2] sm:$0xff]  ;;  %v3947_v11 = vld [vmem:[#allocation2 + $0x18] sm:$0xff]  ;;  %vm1115_vm1 = vcmask 392192  }
  0x5b   : > { %v3949_v9 = vld [vmem:[#allocation2 + $0x28] sm:$0xff]  ;;  %v3948_v10 = vld [vmem:[#allocation2 + $0x20] sm:$0xff]  ;;  %v3951_v14 = vld [vmem:[#allocation2 + $0x38] sm:$0xff]  ;;  %vm1551_vm2 = vcmask 523264   ;;  %vm1763_vm3 = vcmask 1043456   ;;  %vm1756_vm4 = vcmask 64512  }
  0x5c   : > { %s5427_s26 = smov (!%p948_p6, %s3241_s26), 3  ;;  %1124 = vmatpush.bf16.msra.mxu3 %v3949_v9  ;;  %v3952_v13 = vld [vmem:[#allocation2 + $0x40] sm:$0xff]  ;;  %v3950_v18 = vld [vmem:[#allocation2 + $0x30] sm:$0xff]  ;;  %v3955_v23 = vld [vmem:[#allocation2 + $0x58] sm:$0xff]  ;;  %vm1800_vm5 = vcmask 261120   ;;  %p953_p7 = scmp.lt.s32.totalorder %s4917_s30, 1 }
  0x5d   : > { %s3242_s3 = sshll.u32 %s5427_s26, 2  ;;  %1246 = vmatpush.bf16.msra.mxu1 %v3955_v23  ;;  %v3954_v24 = vld [vmem:[#allocation2 + $0x50] sm:$0xff]  ;;  %v3953_v28 = vld [vmem:[#allocation2 + $0x48] sm:$0xff]  ;;  %v3956_v38 = vld [vmem:[#allocation2 + $0x60] sm:$0xff]  ;;  %s5424_s26 = sld [smem:[#allocation37_spill]] }
  0x5e   : > { %1165 = vmatpush.bf16.msra.mxu2 %v3945_v7  ;;  %v3958_v33 = vld [vmem:[#allocation2 + $0x70] sm:$0xff]  ;;  %v3957_v34 = vld [vmem:[#allocation2 + $0x68] sm:$0xff]  ;;  %v3972_v60 = vld [vmem:[#allocation6 + $0x28] sm:$0xff]  ;;  %s5429_s30 = smov (!%p953_p7, %s4917_s30), 1 }
  0x5f   : > { %s951_s9 = scalar_lea.vmem %s5422_s4, %s3242_s3  ;;  %v3974_v56 = vld [vmem:[#allocation6 + $0x38] sm:$0xff]  ;;  %v3973_v58 = vld [vmem:[#allocation6 + $0x30] sm:$0xff]  ;;  %v3964_v61 = vld [vmem:[#allocation4 + $0x28] sm:$0xff]  ;;  %s3243_s0 = sshll.u32 %s5429_s30, 3 }
  0x60   : > { %v3938_v0 = vld [vmem:[%s951_s9] sm:$0xff]  ;;  %v3940_v2 = vld [vmem:[%s5423_s20 + $0x8] sm:$0xff]  ;;  %v3941_v3 = vld [vmem:[%s5423_s20 + $0x10] sm:$0xff]  ;;  %1125 = vmatpush.bf16.msra.mxu3 %v3948_v10  ;;  %s956_s7 = scalar_lea.vmem %s5393_s23, %s3243_s0 }
  0x61   : > { %v3939_v1 = vld [vmem:[%s5423_s20] sm:$0xff]  ;;  %1055 = vmatpush.bf16.msra.mxu0 %v3938_v0  ;;  %v3942_v4 = vld [vmem:[%s5423_s20 + $0x18] sm:$0xff]  ;;  %1247 = vmatpush.bf16.msra.mxu1 %v3954_v24  ;;  %v3966_v57 = vld [vmem:[#allocation4 + $0x38] sm:$0xff] }
  0x62   : > { %v3943_v5 = vld [vmem:[%s5423_s20 + $0x20] sm:$0xff]  ;;  %1166 = vmatpush.bf16.msra.mxu2 %v3944_v8  ;;  %v3965_v59 = vld [vmem:[#allocation4 + $0x30] sm:$0xff]  ;;  %v3971_v62 = vld [vmem:[#allocation6 + $0x20] sm:$0xff] }
  0x63   : > { %v3963_v63 = vld [vmem:[#allocation4 + $0x20] sm:$0xff]  ;;  %v3970_v0 = vld [vmem:[#allocation6 + $0x18] sm:$0xff]  ;;  %v3960_v6 = vld [vmem:[#allocation4 + $0x8] sm:$0xff] }
  0x64   : > { %3268 = vmatmul.msk.bf16.vlgmr.msra.gmra.mxu0 %vm1032_vm0, %v3939_v1  ;;  %1126 = vmatpush.bf16.msra.mxu3 %v3947_v11  ;;  %v3962_v1 = vld [vmem:[#allocation4 + $0x18] sm:$0xff]  ;;  %v3967_v7 = vld [vmem:[#allocation6] sm:$0xff]  ;;  %v4265_v23 = vld [vmem:[%s5424_s26] ss:$0 sm:$0xff] }
  0x65   : > { %1248 = vmatpush.bf16.msra.mxu1 %v3953_v28  ;;  %v3959_v8 = vld [vmem:[#allocation4] sm:$0xff] }
  0x66   : > { %1288 = vmatpush.bf16.msrb.mxu2 %v3958_v33 }
  0x68   : > { %1204 = vmatpush.bf16.msrb.mxu3 %v3952_v13 }
  0x69   : > { %1449 = vmatpush.bf16.msrb.mxu1 %v3966_v57  ;;  %v3993_v57 = vld [vmem:[#allocation10 + $0x28] sm:$0xff] }
  0x6a   : > { %1289 = vmatpush.bf16.msrb.mxu2 %v3957_v34  ;;  %v3979_v34 = vld [vmem:[#allocation9 + $0x18] sm:$0xff] }
  0x6c   : > { %1205 = vmatpush.bf16.msrb.mxu3 %v3951_v14 }
  0x6d   : > { %1450 = vmatpush.bf16.msrb.mxu1 %v3965_v59 }
  0x6e   : > { %1290 = vmatpush.bf16.msrb.mxu2 %v3956_v38 }
  0x70   : > { %1206 = vmatpush.bf16.msrb.mxu3 %v3950_v18 }
  0x71   : > { %1451 = vmatpush.bf16.msrb.mxu1 %v3964_v61 }
  0x74   : > { %3269 = vmatmul.msk.bf16.gmra.mxu0 %vm1032_vm0, %v3940_v2 }
  0x75   : > { %1452 = vmatpush.bf16.msrb.mxu1 %v3963_v63 }
  0x79   : > { %1453 = vmatpush.bf16.msrb.mxu1 %v3962_v1 }
  0x84   : > { %3270 = vmatmul.msk.bf16.gmra.mxu0 %vm1032_vm0, %v3941_v3  ;;  %v3969_v3 = vld [vmem:[#allocation6 + $0x10] sm:$0xff] }
  0x94   : > { %3271 = vmatmul.msk.bf16.gmra.mxu0 %vm1032_vm0, %v3942_v4  ;;  %v3961_v4 = vld [vmem:[#allocation4 + $0x10] sm:$0xff] }
  0x95   : > { %1454 = vmatpush.bf16.msrb.mxu1 %v3961_v4  ;;  %v3989_v4 = vld [vmem:[#allocation10 + $0x8] sm:$0xff] }
  0x99   : > { %1455 = vmatpush.bf16.msrb.mxu1 %v3960_v6 }
  0x9d   : > { %1456 = vmatpush.bf16.msrb.mxu1 %v3959_v8 }
  0xa4   : > { %3272 = vmatmul.msk.bf16.gmra.mxu0 %vm1032_vm0, %v3943_v5  ;;  %v3968_v5 = vld [vmem:[#allocation6 + $0x8] sm:$0xff] }
  0xe1   : > { %v1057_v12 = vpop.f32.mrf.mxu0 }
  0xe2   : > { %v1082_v15 = vpack.c.bf16 %v1057_v12, %v1057_v12 }
  0xe4   : > { %v1135_v19 = vunpack.c.l.b16 %v1082_v15 }
  0xe9   : > { %v1059_v16 = vpop.f32.mrf.mxu0 }
  0xea   : > { %v1083_v17 = vpack.c.bf16 %v1059_v16, %v1059_v16 }
  0xec   : > { %v1136_v20 = vunpack.c.l.b16 %v1083_v17 }
  0xee   : > { %v1137_v21 = vpack.c.b16 %v1136_v20, %v1135_v19 }
  0xf0   : > { %3298 = vmatmul.msk.bf16.vlgmr.msra.gmra.mxu2 %vm1115_vm1, %v1137_v21 }
  0xf1   : > { %v1062_v22 = vpop.f32.mrf.mxu0 }
  0xf2   : > { %v1084_v25 = vpack.c.bf16 %v1062_v22, %v1062_v22 }
  0xf4   : > { %v1094_v29 = vunpack.c.l.b16 %v1084_v25 }
  0xf9   : > { %v1064_v26 = vpop.f32.mrf.mxu0 }
  0xfa   : > { %v1085_v27 = vpack.c.bf16 %v1064_v26, %v1064_v26 }
  0xfc   : > { %v1095_v30 = vunpack.c.l.b16 %v1085_v27 }
  0xfe   : > { %v1096_v31 = vpack.c.b16 %v1095_v30, %v1094_v29 }
 0x100   : > { %3285 = vmatmul.msk.bf16.vlgmr.msra.gmra.mxu3 %vm1115_vm1, %v1096_v31 }
 0x101   : > { %v1067_v32 = vpop.f32.mrf.mxu0  ;;  %1387 = vmatpush.bf16.msra.mxu3 %v3974_v56  ;;  %v3994_v56 = vld [vmem:[#allocation10 + $0x30] sm:$0xff] }
 0x102   : > { %v1086_v35 = vpack.c.bf16 %v1067_v32, %v1067_v32 }
 0x104   : > { %v1175_v39 = vunpack.c.l.b16 %v1086_v35  ;;  %v3983_v35 = vld [vmem:[#allocation9 + $0x38] sm:$0xff] }
 0x105   : > { %1388 = vmatpush.bf16.msra.mxu3 %v3973_v58 }
 0x109   : > { %v1069_v36 = vpop.f32.mrf.mxu0  ;;  %1389 = vmatpush.bf16.msra.mxu3 %v3972_v60  ;;  %v3992_v60 = vld [vmem:[#allocation10 + $0x20] sm:$0xff] }
 0x10a   : > { %v1087_v37 = vpack.c.bf16 %v1069_v36, %v1069_v36  ;;  %v3978_v36 = vld [vmem:[#allocation9 + $0x10] sm:$0xff] }
 0x10c   : > { %v1176_v40 = vunpack.c.l.b16 %v1087_v37  ;;  %v3977_v37 = vld [vmem:[#allocation9 + $0x8] sm:$0xff] }
 0x10d   : > { %1390 = vmatpush.bf16.msra.mxu3 %v3971_v62 }
 0x10e   : > { %v1177_v41 = vpack.c.b16 %v1176_v40, %v1175_v39 }
 0x110   : > { %3311 = vmatmul.msk.bf16.vlgmr.msrb.gmra.mxu3 %vm1115_vm1, %v1177_v41 }
 0x111   : > { %v1072_v42 = vpop.f32.mrf.mxu0  ;;  %1391 = vmatpush.bf16.msra.mxu3 %v3970_v0 }
 0x112   : > { %v1088_v43 = vpack.c.bf16 %v1072_v42, %v1072_v42 }
 0x114   : > { %v1217_v46 = vunpack.c.l.b16 %v1088_v43  ;;  %v3975_v43 = vld [vmem:[#allocation7] sm:$0xff] }
 0x115   : > { %1392 = vmatpush.bf16.msra.mxu3 %v3969_v3  ;;  %v3990_v3 = vld [vmem:[#allocation10 + $0x10] sm:$0xff] }
 0x119   : > { %v1074_v44 = vpop.f32.mrf.mxu0  ;;  %1393 = vmatpush.bf16.msra.mxu3 %v3968_v5  ;;  %v3988_v5 = vld [vmem:[#allocation10] sm:$0xff] }
 0x11a   : > { %v1089_v45 = vpack.c.bf16 %v1074_v44, %v1074_v44  ;;  %v1466_v44 = vld [vmem:[#allocation7 + $0x8] sm:$0xf] }
 0x11c   : > { %v1218_v47 = vunpack.c.l.b16 %v1089_v45  ;;  %v1497_v45 = vunpack.c.l.b16 %v1466_v44 }
 0x11d   : > { %1394 = vmatpush.bf16.msra.mxu3 %v3967_v7 }
 0x11e   : > { %v1219_v48 = vpack.c.b16 %v1218_v47, %v1217_v46  ;;  %v1499_v46 = vpack.c.b16 %v1497_v45, %v1497_v45  ;;  %v3982_v47 = vld [vmem:[#allocation9 + $0x30] sm:$0xff] }
 0x120   : > { %3324 = vmatmul.msk.bf16.vlgmr.msra.gmra.mxu1 %vm1115_vm1, %v1219_v48  ;;  %v3976_v48 = vld [vmem:[#allocation9] sm:$0xff] }
 0x121   : > { %v1077_v49 = vpop.f32.mrf.mxu0  ;;  %1599 = vmatpush.bf16.msra.mxu1 %v3979_v34  ;;  %1559 = vmatpush.bf16.msrb.mxu3 %v3983_v35  ;;  %v4012_v34 = vld [vmem:[#allocation16 + $0x8] sm:$0xff]  ;;  %v4011_v35 = vld [vmem:[#allocation16] sm:$0xff] }
 0x122   : > { %v1090_v50 = vpack.c.bf16 %v1077_v49, %v1077_v49  ;;  %v3987_v49 = vld [vmem:[#allocation9 + $0x58] sm:$0xff] }
 0x124   : > { %v1259_v53 = vunpack.c.l.b16 %v1090_v50  ;;  %v3981_v50 = vld [vmem:[#allocation9 + $0x28] sm:$0xff] }
 0x125   : > { %1600 = vmatpush.bf16.msra.mxu1 %v3978_v36  ;;  %1560 = vmatpush.bf16.msrb.mxu3 %v3982_v47  ;;  %v3997_v36 = vld [vmem:[#allocation13] sm:$0xff] }
 0x129   : > { %v1079_v51 = vpop.f32.mrf.mxu0  ;;  %1601 = vmatpush.bf16.msra.mxu1 %v3977_v37  ;;  %1561 = vmatpush.bf16.msrb.mxu3 %v3981_v50  ;;  %v4000_v37 = vld [vmem:[#allocation13 + $0x18] sm:$0xff]  ;;  %v4010_v50 = vld [vmem:[#allocation15 + $0x38] sm:$0xff] }
 0x12a   : > { %v1091_v52 = vpack.c.bf16 %v1079_v51, %v1079_v51  ;;  %v3980_v51 = vld [vmem:[#allocation9 + $0x20] sm:$0xff] }
 0x12c   : > { %v1260_v54 = vunpack.c.l.b16 %v1091_v52  ;;  %v3986_v52 = vld [vmem:[#allocation9 + $0x50] sm:$0xff] }
 0x12d   : > { %1602 = vmatpush.bf16.msra.mxu1 %v3976_v48  ;;  %1562 = vmatpush.bf16.msrb.mxu3 %v3980_v51  ;;  %v4009_v51 = vld [vmem:[#allocation15 + $0x30] sm:$0xff] }
 0x12e   : > { %v1261_v55 = vpack.c.b16 %v1260_v54, %v1259_v53  ;;  %v3985_v53 = vld [vmem:[#allocation9 + $0x48] sm:$0xff]  ;;  %v3984_v54 = vld [vmem:[#allocation9 + $0x40] sm:$0xff] }
 0x130   : > { %3337 = vmatmul.msk.bf16.vlgmr.msrb.gmra.mxu2 %vm1115_vm1, %v1261_v55  ;;  %v3995_v55 = vld [vmem:[#allocation10 + $0x38] sm:$0xff] }
 0x131   : > { %1734 = vmatpush.bf16.msrb.mxu0 %v3995_v55  ;;  %v4006_v55 = vld [vmem:[#allocation15 + $0x18] sm:$0xff] }
 0x135   : > { %1735 = vmatpush.bf16.msrb.mxu0 %v3994_v56  ;;  %v4005_v56 = vld [vmem:[#allocation15 + $0x10] sm:$0xff] }
 0x139   : > { %1736 = vmatpush.bf16.msrb.mxu0 %v3993_v57  ;;  %v1927_v57 = vld [vmem:[#allocation18] sm:$0xf] }
 0x13d   : > { %1737 = vmatpush.bf16.msrb.mxu0 %v3992_v60  ;;  %v4004_v60 = vld [vmem:[#allocation15 + $0x8] sm:$0xff] }
 0x173   : > { %v1168_v9 = vpop.f32.mrf.mxu2 }
 0x17b   : > { %v1170_v11 = vpop.f32.mrf.mxu2 }
 0x183   : > { %v1128_v2 = vpop.f32.mrf.mxu3 }
 0x184   : > { %v1169_v14 = vadd.f32 %v1168_v9, %v1128_v2  ;;  %v3991_v2 = vld [vmem:[#allocation10 + $0x18] sm:$0xff] }
 0x185   : > { %1738 = vmatpush.bf16.msrb.mxu0 %v3991_v2 }
 0x189   : > { %1739 = vmatpush.bf16.msrb.mxu0 %v3990_v3 }
 0x18b   : > { %v1130_v10 = vpop.f32.mrf.mxu3 }
 0x18c   : > { %v1171_v18 = vadd.f32 %v1170_v11, %v1130_v10  ;;  %v4266_v10 = vld [vmem:[%s5378_s8] ss:$0 sm:$0xff] }
 0x18d   : > { %1740 = vmatpush.bf16.msrb.mxu0 %v3989_v4 }
 0x191   : > { %1741 = vmatpush.bf16.msrb.mxu0 %v3988_v5 }
 0x193   : > { %v1208_v12 = vpop.f32.mrf.mxu3 }
 0x194   : > { %v1213_v16 = vadd.f32 %v1208_v12, %v1169_v14 }
 0x19b   : > { %v1210_v17 = vpop.f32.mrf.mxu3 }
 0x19c   : > { %v1214_v21 = vadd.f32 %v1210_v17, %v1171_v18 }
 0x19d   : > { %v1250_v13 = vpop.f32.mrf.mxu1 }
 0x19e   : > { %v1255_v19 = vadd.f32 %v1250_v13, %v1213_v16 }
 0x1a5   : > { %v1252_v20 = vpop.f32.mrf.mxu1 }
 0x1a6   : > { %v1256_v24 = vadd.f32 %v1252_v20, %v1214_v21  ;;  %v4018_v20 = vld [vmem:[#allocation16 + $0x38] sm:$0xff] }
 0x1b3   : > { %v1292_v15 = vpop.f32.mrf.mxu2 }
 0x1b4   : > { %v1297_v22 = vadd.f32 %v1292_v15, %v1255_v19 }
 0x1b6   : > { %v1302_v26 = vadd.f32 %v4265_v23, %v1297_v22  ;;  %v3996_v22 = vld [vmem:[#allocation12] sm:$0xff] }
 0x1b8   : > { %v1304_v29 = vmax.f32 %v1302_v26, 0.0  ;;  %v4016_v26 = vld [vmem:[#allocation16 + $0x28] sm:$0xff] }
 0x1bb   : > { %v1294_v25 = vpop.f32.mrf.mxu2 }
 0x1bc   : > { %v1298_v27 = vadd.f32 %v1294_v25, %v1256_v24  ;;  %v3998_v24 = vld [vmem:[#allocation13 + $0x8] sm:$0xff] }
 0x1bd   : > { %1838 = vmatpush.bf16.msra.mxu0 %v3998_v24 }
 0x1be   : > { %v1303_v28 = vadd.f32 %v4265_v23, %v1298_v27  ;;  %v4017_v23 = vld [vmem:[#allocation16 + $0x30] sm:$0xff]  ;;  %v1672_v27 = vld [vmem:[#allocation12 + $0x8] sm:$0xf] }
 0x1c0   : > { %v1305_v30 = vmax.f32 %v1303_v28, 0.0  ;;  %v4015_v28 = vld [vmem:[#allocation16 + $0x20] sm:$0xff] }
 0x1c1   : > { %1839 = vmatpush.bf16.msra.mxu0 %v3997_v36 }
 0x1c2   : > { %v5114_v31 = vpack.c.bf16 %v1305_v30, %v1304_v29  ;;  %v1753_v29 = vunpack.c.l.b16 %v1672_v27  ;;  %v4014_v30 = vld [vmem:[#allocation16 + $0x18] sm:$0xff] }
 0x1c4   : > { %1395 = vmatmul.bf16.vlgmr.msra.gmra.mxu3 %v5114_v31  ;;  %1457 = vmatmul.bf16.vlgmr.msrb.gmra.mxu1 %v5114_v31 }
 0x1c5   : > { %1810 = vmatpush.bf16.msrb.mxu1 %v4000_v37 }
 0x241   : > { %v1458_v32 = vpop.f32.mrf.mxu1 }
 0x247   : > { %v1396_v33 = vpop.f32.mrf.mxu3 }
 0x248   : > { %v1459_v40 = vadd.f32 %v1458_v32, %v1396_v33  ;;  %v1755_v32 = vpack.c.b16 %v1753_v29, %v1753_v29  ;;  %v4013_v33 = vld [vmem:[#allocation16 + $0x10] sm:$0xff]  ;;  %v3624_v29 = vld [vmem:[%s5386_s16 + $0x78] sm:$0xf0] }
 0x249   : > { %v1460_v38 = vpop.f32.mrf.mxu1 }
 0x24f   : > { %v1398_v39 = vpop.f32.mrf.mxu3 }
 0x250   : > { %v1461_v41 = vadd.f32 %v1460_v38, %v1398_v39  ;;  %v3999_v38 = vld [vmem:[#allocation13 + $0x10] sm:$0xff]  ;;  %v4002_v39 = vld [vmem:[#allocation13 + $0x28] sm:$0xff] }
 0x251   : > { %1811 = vmatpush.bf16.msrb.mxu1 %v3999_v38 }
 0x252   : > { %v1463_v42 = vpack.c.bf16 %v1461_v41, %v1459_v40  ;;  %v4001_v40 = vld [vmem:[#allocation13 + $0x20] sm:$0xff] }
 0x254   : > { %1513 = vmatpush.bf16.msra.mxu2 %v1463_v42 }
 0x257   : > { %3406 = vmatmul.msk.bf16.vlgmr.msra.gmra.mxu2 %vm1032_vm0, %v3975_v43 }
 0x258   : > { %1639 = vmatpush.bf16.msrb.mxu2 %v3987_v49 }
 0x25c   : > { %1640 = vmatpush.bf16.msrb.mxu2 %v3986_v52  ;;  %v4008_v52 = vld [vmem:[#allocation15 + $0x28] sm:$0xff] }
 0x260   : > { %1641 = vmatpush.bf16.msrb.mxu2 %v3985_v53  ;;  %v4007_v53 = vld [vmem:[#allocation15 + $0x20] sm:$0xff] }
 0x264   : > { %1642 = vmatpush.bf16.msrb.mxu2 %v3984_v54 }
 0x267   : > { %3407 = vmatmul.msk.bf16.gmra.mxu2 %vm1032_vm0, %v1499_v46 }
 0x268   : > { %2055 = vmatpush.bf16.msra.mxu2 %v4010_v50  ;;  %v3634_v50 = vld [vmem:[%s5386_s16 + $0x8] sm:$0xf0] }
 0x26c   : > { %2056 = vmatpush.bf16.msra.mxu2 %v4009_v51 }
 0x270   : > { %2057 = vmatpush.bf16.msra.mxu2 %v4008_v52 }
 0x274   : > { %2058 = vmatpush.bf16.msra.mxu2 %v4007_v53  ;;  %v3606_v53 = vld [vmem:[%s5386_s16 + $0x50] sm:$0xf] }
 0x278   : > { %2059 = vmatpush.bf16.msra.mxu2 %v4006_v55  ;;  %v4030_v55 = vld [vmem:[%s5386_s16 + $0x54] sm:$0xf] }
 0x27c   : > { %2060 = vmatpush.bf16.msra.mxu2 %v4005_v56 }
 0x280   : > { %2061 = vmatpush.bf16.msra.mxu2 %v4004_v60 }
 0x2da   : > { %v1515_v58 = vpop.f32.mrf.mxu2 }
 0x2db   : > { %v1524_v59 = vpack.c.bf16 %v1515_v58, %v1515_v58 }
 0x2dd   : > { %3441 = vmatmul.msk.bf16.vlgmr.msra.gmra.mxu1 %vm1551_vm2, %v1524_v59 }
 0x2e2   : > { %v1517_v61 = vpop.f32.mrf.mxu2 }
 0x2e3   : > { %v1525_v62 = vpack.c.bf16 %v1517_v61, %v1517_v61  ;;  %v4003_v61 = vld [vmem:[#allocation15] sm:$0xff] }
 0x2e4   : > { %2062 = vmatpush.bf16.msra.mxu2 %v4003_v61 }
 0x2e5   : > { %3424 = vmatmul.msk.bf16.vlgmr.msrb.gmra.mxu3 %vm1551_vm2, %v1525_v62 }
 0x2ea   : > { %v1520_v63 = vpop.f32.mrf.mxu2 }
 0x2eb   : > { %v1526_v0 = vpack.c.bf16 %v1520_v63, %v1520_v63 }
 0x2ed   : > { %3458 = vmatmul.msk.bf16.vlgmr.msrb.gmra.mxu2 %vm1551_vm2, %v1526_v0 }
 0x2f2   : > { %v1522_v1 = vpop.f32.mrf.mxu2 }
 0x35a   : > { %v1604_v6 = vpop.f32.mrf.mxu1 }
 0x362   : > { %v1606_v7 = vpop.f32.mrf.mxu1 }
 0x368   : > { %v1564_v8 = vpop.f32.mrf.mxu3 }
 0x369   : > { %v1605_v9 = vadd.f32 %v1604_v6, %v1564_v8 }
 0x370   : > { %v1566_v11 = vpop.f32.mrf.mxu3  ;;  %v1644_v12 = vpop.f32.mrf.mxu2 }
 0x371   : > { %v1648_v13 = vadd.f32 %v1644_v12, %v1605_v9 }
 0x373   : > { %v1652_v14 = vadd.f32 %v4266_v10, %v1648_v13 }
 0x375   : > { %v5126_v15 = vmax.f32 %v1652_v14, 0.0 }
 0x377   : > { %v1685_v16 = vpack.c.bf16 %v5126_v15, %v5126_v15 }
 0x378   : > { %v1646_v17 = vpop.f32.mrf.mxu2 }
 0x379   : > { %1742 = vmatmul.bf16.vlgmr.msrb.gmra.mxu0 %v1685_v16 }
 0x37a   : > { %1866 = vmatpush.bf16.msrb.mxu0 %v4002_v39 }
 0x37e   : > { %1867 = vmatpush.bf16.msrb.mxu0 %v4001_v40  ;;  %v4019_v40 = vld [vmem:[#allocation19] sm:$0xff] }
 0x3f6   : > { %v1743_v18 = vpop.f32.mrf.mxu0 }
 0x3f7   : > { %v1747_v19 = vpack.c.bf16 %v1743_v18, %v1743_v18 }
 0x3f9   : > { %v1765_v21 = vsel %vm1763_vm3, %v1747_v19, 0 }
 0x3fa   : > { %1774 = vmatpush.bf16.msra.mxu3 %v1765_v21  ;;  %v4026_v21 = vld [vmem:[%s5386_s16 + $0x34] sm:$0xf] }
 0x3fd   : > { %3495 = vmatmul.msk.bf16.vlgmr.msra.gmra.mxu3 %vm1756_vm4, %v3996_v22  ;;  %v3658_v22 = vld [vmem:[%s5386_s16 + $0x38] sm:$0xf0] }
 0x3fe   : > { %1976 = vmatpush.bf16.msrb.mxu3 %v4018_v20  ;;  %v1745_v25 = vpop.f32.mrf.mxu0  ;;  %v3661_v24 = vor.u32 %v4026_v21, %v3658_v22  ;;  %v4041_v21 = vld [vmem:[%s5386_s16 + $0xa4] sm:$0xf0]  ;;  %v4036_v22 = vld [vmem:[%s5386_s16 + $0x84] sm:$0xf] }
 0x3ff   : > { %v3622_v25 = vld [vmem:[%s5386_s16 + $0x70] sm:$0xf] }
 0x400   : > { %2264 = vmatpush.bf16.msrb.mxu2 %v3661_v24 }
 0x402   : > { %1977 = vmatpush.bf16.msrb.mxu3 %v4017_v23  ;;  %v4024_v23 = vld [vmem:[%s5386_s16 + $0x24] sm:$0xf] }
 0x406   : > { %1978 = vmatpush.bf16.msrb.mxu3 %v4016_v26  ;;  %v4035_v26 = vld [vmem:[%s5386_s16 + $0x74] sm:$0xf0] }
 0x407   : > { %v3623_v27 = vor.u32 %v4035_v26, %v3622_v25  ;;  %v3640_v25 = vld [vmem:[%s5386_s16 + $0x10] sm:$0xf]  ;;  %v4023_v26 = vld [vmem:[%s5386_s16 + $0x14] sm:$0xf0] }
 0x40a   : > { %1979 = vmatpush.bf16.msrb.mxu3 %v4015_v28  ;;  %v4034_v28 = vld [vmem:[%s5386_s16 + $0x74] sm:$0xf] }
 0x40d   : > { %3496 = vmatmul.msk.bf16.gmra.mxu3 %vm1756_vm4, %v1755_v32  ;;  %v3627_v32 = vor.u32 %v4034_v28, %v3624_v29  ;;  %v3641_v28 = vor.u32 %v4023_v26, %v3640_v25  ;;  %v4039_v29 = vld [vmem:[%s5386_s16 + $0x94] sm:$0xf0] }
 0x40e   : > { %1980 = vmatpush.bf16.msrb.mxu3 %v4014_v30  ;;  %v3830_v26 = vld [vmem:[#allocation22 + $0x38] sm:$0xf0] }
 0x412   : > { %1981 = vmatpush.bf16.msrb.mxu3 %v4013_v33  ;;  %v4022_v33 = vld [vmem:[%s5386_s16 + $0x14] sm:$0xf] }
 0x416   : > { %1982 = vmatpush.bf16.msrb.mxu3 %v4012_v34  ;;  %v3642_v34 = vld [vmem:[%s5386_s16 + $0x18] sm:$0xf0] }
 0x417   : > { %v3645_v36 = vor.u32 %v4022_v33, %v3642_v34  ;;  %v4021_v33 = vld [vmem:[%s5386_s16 + $0x4] sm:$0xf0]  ;;  %v3666_v34 = vld [vmem:[%s5386_s16 + $0x80] sm:$0xf] }
 0x41a   : > { %1983 = vmatpush.bf16.msrb.mxu3 %v4011_v35 }
 0x41d   : > { %1984 = vmatmul.bf16.vlgmr.msrb.gmra.mxu3 %v5114_v31 }
 0x41e   : > { %2195 = vmatpush.bf16.msra.mxu3 %v3627_v32  ;;  %v3632_v32 = vld [vmem:[%s5386_s16] sm:$0xf] }
 0x480   : > { %v1776_v41 = vpop.f32.mrf.mxu3 }
 0x481   : > { %v1785_v42 = vpack.c.bf16 %v1776_v41, %v1776_v41 }
 0x483   : > { %3514 = vmatmul.msk.bf16.vlgmr.msra.gmra.mxu0 %vm1800_vm5, %v1785_v42  ;;  %v2071_v42 = vld [vmem:[#allocation19 + $0x8] sm:$0xf] }
 0x488   : > { %v1778_v43 = vpop.f32.mrf.mxu3 }
 0x489   : > { %v1786_v44 = vpack.c.bf16 %v1778_v43, %v1778_v43  ;;  %v2102_v43 = vunpack.c.l.b16 %v2071_v42  ;;  %v4057_v42 = vld [vmem:[%s5388_s18 + $0x68] sm:$0xff] }
 0x48b   : > { %3505 = vmatmul.msk.bf16.vlgmr.msrb.gmra.mxu1 %vm1800_vm5, %v1786_v44  ;;  %v2104_v44 = vpack.c.b16 %v2102_v43, %v2102_v43 }
 0x490   : > { %v1781_v45 = vpop.f32.mrf.mxu3 }
 0x491   : > { %v1787_v46 = vpack.c.bf16 %v1781_v45, %v1781_v45  ;;  %v3614_v45 = vld [vmem:[%s5386_s16 + $0x60] sm:$0xf] }
 0x493   : > { %3523 = vmatmul.msk.bf16.vlgmr.msrb.gmra.mxu0 %vm1800_vm5, %v1787_v46  ;;  %v4033_v46 = vld [vmem:[%s5386_s16 + $0x64] sm:$0xf0] }
 0x498   : > { %v1783_v31 = vpop.f32.mrf.mxu3 }
 0x499   : > { %v4032_v31 = vld [vmem:[%s5386_s16 + $0x64] sm:$0xf] }
 0x4a0   : > { %v1985_v47 = vpop.f32.mrf.mxu3 }
 0x4a8   : > { %v1987_v48 = vpop.f32.mrf.mxu3 }
 0x4a9   : > { %v1990_v49 = vpack.c.bf16 %v1987_v48, %v1985_v47  ;;  %v3615_v47 = vor.u32 %v4033_v46, %v3614_v45  ;;  %v3616_v48 = vld [vmem:[%s5386_s16 + $0x68] sm:$0xf0] }
 0x4aa   : > { %v3619_v51 = vor.u32 %v4032_v31, %v3616_v48  ;;  %v4051_v48 = vld [vmem:[%s5388_s18 + $0x38] sm:$0xff] }
 0x4ab   : > { %2001 = vmatpush.bf16.msra.mxu1 %v1990_v49  ;;  %v4020_v49 = vld [vmem:[%s5386_s16 + $0x4] sm:$0xf] }
 0x4ac   : > { %v3637_v52 = vor.u32 %v4020_v49, %v3634_v50  ;;  %2196 = vmatpush.bf16.msra.mxu3 %v3619_v51  ;;  %v4055_v49 = vld [vmem:[%s5388_s18 + $0x58] sm:$0xff]  ;;  %v4050_v50 = vld [vmem:[%s5388_s18 + $0x30] sm:$0xff] }
 0x4ad   : > { %v4054_v51 = vld [vmem:[%s5388_s18 + $0x50] sm:$0xff] }
 0x4ae   : > { %3557 = vmatmul.msk.bf16.vlgmr.msra.gmra.mxu1 %vm1032_vm0, %v1927_v57  ;;  %v3608_v57 = vld [vmem:[%s5386_s16 + $0x58] sm:$0xf0] }
 0x4af   : > { %2182 = vmatpush.bf16.msrb.mxu1 %v3623_v27  ;;  %v3611_v60 = vor.u32 %v4030_v55, %v3608_v57  ;;  %v3674_v27 = vld [vmem:[%s5386_s16 + $0x90] sm:$0xf]  ;;  %v4052_v55 = vld [vmem:[%s5388_s18 + $0x40] sm:$0xff] }
 0x4b0   : > { %v4046_v57 = vld [vmem:[%s5388_s18 + $0x10] sm:$0xff] }
 0x4b1   : > { %2197 = vmatpush.bf16.msra.mxu3 %v3611_v60 }
 0x4b3   : > { %2183 = vmatpush.bf16.msrb.mxu1 %v3615_v47  ;;  %v4056_v47 = vld [vmem:[%s5388_s18 + $0x60] sm:$0xff] }
 0x500   : > { %v1841_v54 = vpop.f32.mrf.mxu0 }
 0x508   : > { %v1813_v58 = vpop.f32.mrf.mxu1  ;;  %v1843_v59 = vpop.f32.mrf.mxu0 }
 0x509   : > { %v1842_v62 = vadd.f32 %v1841_v54, %v1813_v58  ;;  %v4031_v54 = vld [vmem:[%s5386_s16 + $0x54] sm:$0xf0]  ;;  %v4042_v58 = vld [vmem:[%s5386_s16 + $0xb4] sm:$0xf]  ;;  %v3692_v59 = vld [vmem:[%s5386_s16 + $0xb8] sm:$0xf0] }
 0x50a   : > { %v3607_v56 = vor.u32 %v4031_v54, %v3606_v53  ;;  %v3695_v61 = vor.u32 %v4042_v58, %v3692_v59  ;;  %v4053_v53 = vld [vmem:[%s5388_s18 + $0x48] sm:$0xff]  ;;  %v4048_v54 = vld [vmem:[%s5388_s18 + $0x20] sm:$0xff] }
 0x50b   : > { %v4045_v58 = vld [vmem:[%s5388_s18 + $0x8] sm:$0xff]  ;;  %v4044_v59 = vld [vmem:[%s5388_s18] sm:$0xff] }
 0x50c   : > { %2184 = vmatpush.bf16.msrb.mxu1 %v3607_v56  ;;  %v4047_v56 = vld [vmem:[%s5388_s18 + $0x18] sm:$0xff] }
 0x510   : > { %v1815_v63 = vpop.f32.mrf.mxu1  ;;  %v1869_v0 = vpop.f32.mrf.mxu0 }
 0x511   : > { %v1873_v1 = vadd.f32 %v1869_v0, %v1842_v62  ;;  %v3598_v62 = vld [vmem:[%s5386_s16 + $0x40] sm:$0xf]  ;;  %v4029_v63 = vld [vmem:[%s5386_s16 + $0x44] sm:$0xf0]  ;;  %v4028_v0 = vld [vmem:[%s5386_s16 + $0x44] sm:$0xf] }
 0x513   : > { %v3524_v2 = vmul.f32 -1.442695, %v1873_v1  ;;  %v3599_v1 = vor.u32 %v4029_v63, %v3598_v62  ;;  %v2096_v62 = vld [vmem:[%s5387_s17] sm:$0x3] }
 0x515   : > { %4267 = vpow2.f32 %v3524_v2  ;;  %v3600_v2 = vld [vmem:[%s5386_s16 + $0x48] sm:$0xf0]  ;;  %2185 = vmatpush.bf16.msrb.mxu1 %v3599_v1 }
 0x518   : > { %v1871_v3 = vpop.f32.mrf.mxu0 }
 0x519   : > { %v4040_v3 = vld [vmem:[%s5386_s16 + $0xa4] sm:$0xf] }
 0x51b   : > { %v4268_v4 = vpop.eup %4267 }
 0x51c   : > { %v1877_v5 = vadd.f32 1.0, %v4268_v4  ;;  %v3684_v4 = vld [vmem:[%s5386_s16 + $0xa8] sm:$0xf0] }
 0x51e   : > { %4269 = vrcp.f32 %v1877_v5  ;;  %v1889_v9 = vand.u32 2147483648, %v1877_v5  ;;  %v1887_v11 = vand.u32 2147483647, %v1877_v5  ;;  %vm1883_vm7 = vweird.f32 %v1877_v5 }
 0x520   : > { %v1890_v13 = vor.u32 1.1754944e-38, %v1889_v9  ;;  %vm1888_vm9 = vcmp.eq.f32.partialorder %v1887_v11, 8.507059e+37  ;;  %v3690_v9 = vld [vmem:[%s5386_s16 + $0xb0] sm:$0xf]  ;;  %v4043_v11 = vld [vmem:[%s5386_s16 + $0xb4] sm:$0xf0] }
 0x524   : > { %v4270_v6 = vpop.eup %4269 }
 0x525   : > { %v1879_v7 = vmul.f32 %v4270_v6, %v1877_v5  ;;  %vm1884_vm6 = vweird.f32 %v4270_v6  ;;  %v3603_v5 = vor.u32 %v4028_v0, %v3600_v2  ;;  %v2346_v2 = vperm.slane %v2096_v62, 1 }
 0x526   : > { %vm1885_vm8 = vmor %vm1883_vm7, %vm1884_vm6 }
 0x527   : > { %v1880_v8 = vsub.f32 1.0, %v1879_v7  ;;  %2198 = vmatpush.bf16.msra.mxu3 %v3603_v5  ;;  %v3656_v7 = vld [vmem:[%s5386_s16 + $0x30] sm:$0xf] }
 0x529   : > { %v1881_v10 = vmul.f32 %v4270_v6, %v1880_v8  ;;  %v4027_v8 = vld [vmem:[%s5386_s16 + $0x34] sm:$0xf0] }
 0x52b   : > { %v1882_v12 = vadd.f32 %v4270_v6, %v1881_v10  ;;  %v2003_v19 = vpop.f32.mrf.mxu1  ;;  %v3657_v10 = vor.u32 %v4027_v8, %v3656_v7 }
 0x52d   : > { %v1886_v14 = vsel %vm1885_vm8, %v4270_v6, %v1882_v12  ;;  %v3687_v6 = vor.u32 %v4040_v3, %v3684_v4  ;;  %v4038_v12 = vld [vmem:[%s5386_s16 + $0x94] sm:$0xf]  ;;  %2251 = vmatpush.bf16.msra.mxu1 %v3657_v10 }
 0x52e   : > { %v1891_v16 = vsel %vm1888_vm9, %v1890_v13, %v1886_v14  ;;  %v3676_v13 = vld [vmem:[%s5386_s16 + $0x98] sm:$0xf0]  ;;  %v3691_v14 = vor.u32 %v4043_v11, %v3690_v9 }
 0x52f   : > { %v1893_v17 = vmul.f32 %v1891_v16, %v5126_v15  ;;  %v3650_v15 = vld [vmem:[%s5386_s16 + $0x28] sm:$0xf0]  ;;  %v3679_v16 = vor.u32 %v4038_v12, %v3676_v13  ;;  %v2345_v13 = vperm.slane %v2096_v62, 0 }
 0x530   : > { %v3653_v30 = vor.u32 %v4024_v23, %v3650_v15  ;;  %2320 = vmatpush.bf16.msrb.mxu3 %v3691_v14  ;;  %v3668_v23 = vld [vmem:[%s5386_s16 + $0x88] sm:$0xf0] }
 0x531   : > { %v1894_v18 = vpack.c.bf16 %v1893_v17, %v1893_v17  ;;  %v3648_v17 = vld [vmem:[%s5386_s16 + $0x20] sm:$0xf]  ;;  %v3671_v15 = vor.u32 %v4036_v22, %v3668_v23  ;;  %v3828_v23 = vld [vmem:[#allocation22 + $0x30] sm:$0xf] }
 0x532   : > { %2265 = vmatpush.bf16.msrb.mxu2 %v3653_v30  ;;  %v3675_v30 = vor.u32 %v4039_v29, %v3674_v27  ;;  %v3794_v27 = vld [vmem:[#allocation22 + $0x70] sm:$0xf] }
 0x533   : > { %2063 = vmatmul.bf16.vlgmr.msra.gmra.mxu2 %v1894_v18  ;;  %v2005_v20 = vpop.f32.mrf.mxu1  ;;  %v4025_v18 = vld [vmem:[%s5386_s16 + $0x24] sm:$0xf0]  ;;  %v3778_v62 = vld [vmem:[#allocation22 + $0x50] sm:$0xf] }
 0x534   : > { %v3649_v20 = vor.u32 %v4025_v18, %v3648_v17 }
 0x536   : > { %2266 = vmatpush.bf16.msrb.mxu2 %v3645_v36  ;;  %2252 = vmatpush.bf16.msra.mxu1 %v3649_v20  ;;  %v4037_v36 = vld [vmem:[%s5386_s16 + $0x84] sm:$0xf0] }
 0x53a   : > { %2267 = vmatpush.bf16.msrb.mxu2 %v3637_v52  ;;  %2253 = vmatpush.bf16.msra.mxu1 %v3641_v28  ;;  %v4049_v52 = vld [vmem:[%s5388_s18 + $0x28] sm:$0xff]  ;;  %v4076_v28 = vld [vmem:[#allocation22 + $0x74] sm:$0xf0] }
 0x5b6   : > { %v2064_v35 = vpop.f32.mrf.mxu2 }
 0x5b7   : > { %v2065_v37 = vadd.f32 %v2064_v35, %v2003_v19  ;;  %v3682_v19 = vld [vmem:[%s5386_s16 + $0xa0] sm:$0xf]  ;;  %v3633_v35 = vor.u32 %v4021_v33, %v3632_v32  ;;  %v3820_v32 = vld [vmem:[#allocation22 + $0x20] sm:$0xf]  ;;  %v4066_v33 = vld [vmem:[#allocation22 + $0x24] sm:$0xf0] }
 0x5b8   : > { %v3683_v24 = vor.u32 %v4041_v21, %v3682_v19 }
 0x5b9   : > { %v2068_v38 = vpack.c.bf16 %v2065_v37, %v2065_v37  ;;  %v3667_v37 = vor.u32 %v4037_v36, %v3666_v34  ;;  %2254 = vmatpush.bf16.msra.mxu1 %v3633_v35  ;;  %v4065_v34 = vld [vmem:[#allocation22 + $0x24] sm:$0xf]  ;;  %v3821_v35 = vor.u32 %v4066_v33, %v3820_v32  ;;  %v3822_v36 = vld [vmem:[#allocation22 + $0x28] sm:$0xf0]  ;;  %v4083_v33 = vld [vmem:[#allocation22 + $0xb4] sm:$0xf] }
 0x5ba   : > { %2321 = vmatpush.bf16.msrb.mxu3 %v3683_v24  ;;  %v4068_v24 = vld [vmem:[#allocation22 + $0x34] sm:$0xf0] }
 0x5bb   : > { %v2112_v39 = vsel %vm1763_vm3, %v2068_v38, 0  ;;  %v4059_v38 = vld [vmem:[%s5388_s18 + $0x78] sm:$0xff]  ;;  %v3829_v25 = vor.u32 %v4068_v24, %v3828_v23  ;;  %v4078_v23 = vld [vmem:[#allocation22 + $0x84] sm:$0xf0] }
 0x5bc   : > { %2121 = vmatpush.bf16.msra.mxu0 %v2112_v39  ;;  %2523 = vmatpush.bf16.msra.mxu2 %v4059_v38  ;;  %v4058_v39 = vld [vmem:[%s5388_s18 + $0x70] sm:$0xff] }
 0x5be   : > { %v2066_v41 = vpop.f32.mrf.mxu2  ;;  %2322 = vmatpush.bf16.msrb.mxu3 %v3675_v30  ;;  %v3795_v30 = vor.u32 %v4076_v28, %v3794_v27  ;;  %v4069_v27 = vld [vmem:[#allocation22 + $0x44] sm:$0xf]  ;;  %v3772_v28 = vld [vmem:[#allocation22 + $0x48] sm:$0xf0] }
 0x5bf   : > { %3594 = vmatmul.msk.bf16.vlgmr.msra.gmra.mxu0 %vm1756_vm4, %v4019_v40 }
 0x5c0   : > { %2333 = vmatpush.bf16.msrb.mxu0 %v3695_v61  ;;  %2524 = vmatpush.bf16.msra.mxu2 %v4058_v39 }
 0x5c2   : > { %2323 = vmatpush.bf16.msrb.mxu3 %v3667_v37  ;;  %v3825_v37 = vor.u32 %v4065_v34, %v3822_v36  ;;  %v3864_v34 = vld [vmem:[#allocation22 + $0xb8] sm:$0xf0] }
 0x5c3   : > { %v3867_v36 = vor.u32 %v4083_v33, %v3864_v34 }
 0x5c4   : > { %2334 = vmatpush.bf16.msrb.mxu0 %v3687_v6  ;;  %2525 = vmatpush.bf16.msra.mxu2 %v4057_v42 }
 0x5c8   : > { %2335 = vmatpush.bf16.msrb.mxu0 %v3679_v16  ;;  %2526 = vmatpush.bf16.msra.mxu2 %v4056_v47  ;;  %v3812_v47 = vld [vmem:[#allocation22 + $0x10] sm:$0xf] }
 0x5cc   : > { %2336 = vmatpush.bf16.msrb.mxu0 %v3671_v15  ;;  %2527 = vmatpush.bf16.msra.mxu2 %v4055_v49  ;;  %v4067_v15 = vld [vmem:[#allocation22 + $0x34] sm:$0xf] }
 0x5cd   : > { %v3833_v29 = vor.u32 %v4067_v15, %v3830_v26  ;;  %v4063_v49 = vld [vmem:[#allocation22 + $0x14] sm:$0xf] }
 0x5ce   : > { %v4071_v15 = vld [vmem:[#allocation22 + $0x54] sm:$0xf] }
 0x5cf   : > { %3595 = vmatmul.msk.bf16.gmra.mxu0 %vm1756_vm4, %v2104_v44 }
 0x5d0   : > { %2528 = vmatpush.bf16.msra.mxu2 %v4054_v51  ;;  %2622 = vmatpush.bf16.msra.mxu0 %v3795_v30  ;;  %v3814_v51 = vld [vmem:[#allocation22 + $0x18] sm:$0xf0] }
 0x5d4   : > { %2529 = vmatpush.bf16.msra.mxu2 %v4053_v53  ;;  %v3786_v53 = vld [vmem:[#allocation22 + $0x60] sm:$0xf] }
 0x5d8   : > { %2530 = vmatpush.bf16.msra.mxu2 %v4052_v55  ;;  %v3804_v55 = vld [vmem:[#allocation22] sm:$0xf] }
 0x63c   : > { %v2123_v40 = vpop.f32.mrf.mxu0 }
 0x63d   : > { %v2132_v41 = vpack.c.bf16 %v2123_v40, %v2123_v40 }
 0x63f   : > { %3663 = vmatmul.msk.bf16.vlgmr.msrb.gmra.mxu2 %vm1551_vm2, %v2132_v41 }
 0x640   : > { %2704 = vmatpush.bf16.msrb.mxu2 %v3833_v29  ;;  %v3775_v29 = vor.u32 %v4069_v27, %v3772_v28 }
 0x644   : > { %v2125_v43 = vpop.f32.mrf.mxu0  ;;  %2705 = vmatpush.bf16.msrb.mxu2 %v3825_v37 }
 0x645   : > { %v2133_v44 = vpack.c.bf16 %v2125_v43, %v2125_v43  ;;  %v4060_v43 = vld [vmem:[#allocation21] sm:$0xff] }
 0x647   : > { %3628 = vmatmul.msk.bf16.vlgmr.msrb.gmra.mxu1 %vm1551_vm2, %v2133_v44  ;;  %3629 = vmatmul.msk.bf16.vlgmr.msra.gmra.mxu3 %vm1551_vm2, %v2133_v44 }
 0x648   : > { %2510 = vmatpush.bf16.msrb.mxu1 %v4051_v48  ;;  %v4064_v48 = vld [vmem:[#allocation22 + $0x14] sm:$0xf0] }
 0x64c   : > { %v2128_v45 = vpop.f32.mrf.mxu0  ;;  %2511 = vmatpush.bf16.msrb.mxu1 %v4050_v50  ;;  %v3813_v50 = vor.u32 %v4064_v48, %v3812_v47 }
 0x64d   : > { %v2134_v46 = vpack.c.bf16 %v2128_v45, %v2128_v45  ;;  %v2387_v45 = vld [vmem:[#allocation21 + $0x8] sm:$0xf] }
 0x64f   : > { %3697 = vmatmul.msk.bf16.vlgmr.msrb.gmra.mxu0 %vm1551_vm2, %v2134_v46 }
 0x650   : > { %2512 = vmatpush.bf16.msrb.mxu1 %v4049_v52  ;;  %v3817_v52 = vor.u32 %v4063_v49, %v3814_v51 }
 0x652   : > { %2706 = vmatpush.bf16.msrb.mxu2 %v3817_v52 }
 0x654   : > { %v2130_v31 = vpop.f32.mrf.mxu0  ;;  %2513 = vmatpush.bf16.msrb.mxu1 %v4048_v54  ;;  %v4074_v54 = vld [vmem:[#allocation22 + $0x64] sm:$0xf0] }
 0x657   : > { %3662 = vmatmul.msk.bf16.vlgmr.msra.gmra.mxu1 %vm1551_vm2, %v2132_v41  ;;  %3696 = vmatmul.msk.bf16.vlgmr.msrb.gmra.mxu3 %vm1551_vm2, %v2134_v46  ;;  %v2542_v46 = vunpack.c.l.b16 %v2387_v45 }
 0x658   : > { %2514 = vmatpush.bf16.msrb.mxu1 %v4047_v56  ;;  %v3787_v56 = vor.u32 %v4074_v54, %v3786_v53  ;;  %v4092_v53 = vld [vmem:[#allocation24 + $0x38] sm:$0xff] }
 0x659   : > { %v2544_v31 = vpack.c.b16 %v2542_v46, %v2542_v46  ;;  %v4077_v46 = vld [vmem:[#allocation22 + $0x84] sm:$0xf] }
 0x65a   : > { %2623 = vmatpush.bf16.msra.mxu0 %v3787_v56 }
 0x65c   : > { %2515 = vmatpush.bf16.msrb.mxu1 %v4046_v57  ;;  %v4062_v57 = vld [vmem:[#allocation22 + $0x4] sm:$0xf0] }
 0x660   : > { %2516 = vmatpush.bf16.msrb.mxu1 %v4045_v58  ;;  %v4061_v58 = vld [vmem:[#allocation22 + $0x4] sm:$0xf] }
 0x664   : > { %2517 = vmatpush.bf16.msrb.mxu1 %v4044_v59  ;;  %v3806_v59 = vld [vmem:[#allocation22 + $0x8] sm:$0xf0] }
 0x668   : > { %2691 = vmatpush.bf16.msra.mxu1 %v3829_v25  ;;  %v3780_v25 = vld [vmem:[#allocation22 + $0x58] sm:$0xf0] }
 0x669   : > { %v3783_v26 = vor.u32 %v4071_v15, %v3780_v25  ;;  %v4095_v15 = vld [vmem:[#allocation24 + $0x50] sm:$0xff] }
 0x66c   : > { %2692 = vmatpush.bf16.msra.mxu1 %v3821_v35 }
 0x670   : > { %2693 = vmatpush.bf16.msra.mxu1 %v3813_v50 }
 0x6c2   : > { %v2269_v60 = vpop.f32.mrf.mxu2 }
 0x6c4   : > { %v2187_v61 = vpop.f32.mrf.mxu1 }
 0x6ca   : > { %v2200_v63 = vpop.f32.mrf.mxu3  ;;  %v2271_v0 = vpop.f32.mrf.mxu2 }
 0x6cb   : > { %v2270_v1 = vadd.f32 %v2269_v60, %v2200_v63  ;;  %v3805_v60 = vor.u32 %v4062_v57, %v3804_v55  ;;  %v4072_v63 = vld [vmem:[#allocation22 + $0x54] sm:$0xf0]  ;;  %v3862_v0 = vld [vmem:[#allocation22 + $0xb0] sm:$0xf]  ;;  %v4090_v57 = vld [vmem:[#allocation24 + $0x28] sm:$0xff] }
 0x6cc   : > { %v2189_v3 = vpop.f32.mrf.mxu1  ;;  %v2338_v4 = vpop.f32.mrf.mxu0  ;;  %v4091_v55 = vld [vmem:[#allocation24 + $0x30] sm:$0xff] }
 0x6cd   : > { %v2343_v5 = vadd.f32 %v2338_v4, %v2270_v1  ;;  %2694 = vmatpush.bf16.msra.mxu1 %v3805_v60  ;;  %v3779_v1 = vor.u32 %v4072_v63, %v3778_v62  ;;  %v3770_v4 = vld [vmem:[#allocation22 + $0x40] sm:$0xf] }
 0x6ce   : > { %v4089_v60 = vld [vmem:[#allocation24 + $0x20] sm:$0xff] }
 0x6cf   : > { %v2350_v6 = vadd.f32 %v2346_v2, %v2343_v5  ;;  %v4084_v2 = vld [vmem:[#allocation22 + $0xb4] sm:$0xf0]  ;;  %2624 = vmatpush.bf16.msra.mxu0 %v3779_v1  ;;  %v4070_v5 = vld [vmem:[#allocation22 + $0x44] sm:$0xf0] }
 0x6d0   : > { %v3863_v3 = vor.u32 %v4084_v2, %v3862_v0  ;;  %v4088_v0 = vld [vmem:[#allocation24 + $0x18] sm:$0xff] }
 0x6d1   : > { %v5340_v7 = vmax.f32 %v2350_v6, 0.0  ;;  %v3854_v6 = vld [vmem:[#allocation22 + $0xa0] sm:$0xf]  ;;  %v4100_v1 = vld [vmem:[#allocation24 + $0x78] sm:$0xff] }
 0x6d2   : > { %v2202_v8 = vpop.f32.mrf.mxu3 }
 0x6d3   : > { %v2413_v9 = vpack.c.bf16 %v5340_v7, %v5340_v7  ;;  %v3771_v8 = vor.u32 %v4070_v5, %v3770_v4  ;;  %v4099_v5 = vld [vmem:[#allocation24 + $0x70] sm:$0xff] }
 0x6d4   : > { %v2256_v10 = vpop.f32.mrf.mxu1  ;;  %v2340_v11 = vpop.f32.mrf.mxu0 }
 0x6d5   : > { %2531 = vmatmul.bf16.vlgmr.msra.gmra.mxu2 %v2413_v9  ;;  %v2257_v12 = vadd.f32 %v2256_v10, %v2187_v61  ;;  %v3809_v61 = vor.u32 %v4061_v58, %v3806_v59  ;;  %v4082_v9 = vld [vmem:[#allocation22 + $0xa4] sm:$0xf0]  ;;  %2625 = vmatpush.bf16.msra.mxu0 %v3771_v8  ;;  %v4075_v11 = vld [vmem:[#allocation22 + $0x74] sm:$0xf] }
 0x6d6   : > { %v3855_v10 = vor.u32 %v4082_v9, %v3854_v6  ;;  %v4086_v9 = vld [vmem:[#allocation24 + $0x8] sm:$0xff] }
 0x6d7   : > { %2707 = vmatpush.bf16.msrb.mxu2 %v3809_v61 }
 0x6da   : > { %v2325_v14 = vpop.f32.mrf.mxu3 }
 0x6db   : > { %v2342_v16 = vadd.f32 %v2325_v14, %v2257_v12  ;;  %v3796_v12 = vld [vmem:[#allocation22 + $0x78] sm:$0xf0]  ;;  %2993 = vmatpush.bf16.msra.mxu2 %v4100_v1 }
 0x6dc   : > { %v2258_v17 = vpop.f32.mrf.mxu1  ;;  %v3799_v14 = vor.u32 %v4075_v11, %v3796_v12  ;;  %v4085_v11 = vld [vmem:[#allocation24] sm:$0xff] }
 0x6dd   : > { %v2349_v18 = vadd.f32 %v2345_v13, %v2342_v16  ;;  %v3846_v13 = vld [vmem:[#allocation22 + $0x90] sm:$0xf]  ;;  %v4080_v16 = vld [vmem:[#allocation22 + $0x94] sm:$0xf0]  ;;  %v4097_v12 = vld [vmem:[#allocation24 + $0x60] sm:$0xff] }
 0x6de   : > { %v3847_v17 = vor.u32 %v4080_v16, %v3846_v13  ;;  %2635 = vmatpush.bf16.msrb.mxu0 %v3799_v14 }
 0x6df   : > { %v5344_v19 = vmax.f32 %v2349_v18, 0.0  ;;  %v4073_v18 = vld [vmem:[#allocation22 + $0x64] sm:$0xf]  ;;  %2994 = vmatpush.bf16.msra.mxu2 %v4099_v5 }
 0x6e1   : > { %v2412_v20 = vpack.c.bf16 %v5344_v19, %v5344_v19 }
 0x6e2   : > { %v2327_v21 = vpop.f32.mrf.mxu3 }
 0x6e3   : > { %2518 = vmatmul.bf16.vlgmr.msrb.gmra.mxu1 %v2412_v20  ;;  %v3788_v20 = vld [vmem:[#allocation22 + $0x68] sm:$0xf0]  ;;  %v3838_v21 = vld [vmem:[#allocation22 + $0x80] sm:$0xf] }
 0x6e4   : > { %v3839_v24 = vor.u32 %v4078_v23, %v3838_v21  ;;  %2980 = vmatpush.bf16.msrb.mxu1 %v4092_v53  ;;  %v4790_v21 = vmov 8.0  }
 0x6e8   : > { %2981 = vmatpush.bf16.msrb.mxu1 %v4091_v55 }
 0x6ec   : > { %2982 = vmatpush.bf16.msrb.mxu1 %v4090_v57 }
 0x6f0   : > { %2983 = vmatpush.bf16.msrb.mxu1 %v4089_v60 }
 0x6f4   : > { %2984 = vmatpush.bf16.msrb.mxu1 %v4088_v0 }
 0x758   : > { %v2532_v22 = vpop.f32.mrf.mxu2 }
 0x760   : > { %v2519_v38 = vpop.f32.mrf.mxu1  ;;  %v2534_v39 = vpop.f32.mrf.mxu2 }
 0x761   : > { %v2533_v40 = vadd.f32 %v2532_v22, %v2519_v38  ;;  %v3791_v22 = vor.u32 %v4073_v18, %v3788_v20  ;;  %v4081_v38 = vld [vmem:[#allocation22 + $0xa4] sm:$0xf]  ;;  %v3856_v39 = vld [vmem:[#allocation22 + $0xa8] sm:$0xf0] }
 0x763   : > { %v2536_v41 = vpack.c.bf16 %v2533_v40, %v2533_v40  ;;  %2636 = vmatpush.bf16.msrb.mxu0 %v3791_v22  ;;  %v3859_v40 = vor.u32 %v4081_v38, %v3856_v39  ;;  %v4096_v22 = vld [vmem:[#allocation24 + $0x58] sm:$0xff]  ;;  %v4093_v39 = vld [vmem:[#allocation24 + $0x40] sm:$0xff] }
 0x765   : > { %v2552_v42 = vsel %vm1763_vm3, %v2536_v41, 0  ;;  %v4079_v41 = vld [vmem:[#allocation22 + $0x94] sm:$0xf] }
 0x766   : > { %2561 = vmatpush.bf16.msra.mxu3 %v2552_v42  ;;  %v3848_v42 = vld [vmem:[#allocation22 + $0x98] sm:$0xf0] }
 0x767   : > { %2637 = vmatpush.bf16.msrb.mxu0 %v3783_v26 }
 0x768   : > { %v2521_v44 = vpop.f32.mrf.mxu1 }
 0x769   : > { %3766 = vmatmul.msk.bf16.vlgmr.msra.gmra.mxu3 %vm1756_vm4, %v4060_v43  ;;  %v3851_v44 = vor.u32 %v4079_v41, %v3848_v42 }
 0x76a   : > { %2760 = vmatpush.bf16.msrb.mxu3 %v3863_v3  ;;  %v4087_v3 = vld [vmem:[#allocation24 + $0x10] sm:$0xff] }
 0x76b   : > { %2638 = vmatpush.bf16.msrb.mxu0 %v3775_v29  ;;  %2985 = vmatpush.bf16.msrb.mxu1 %v4087_v3 }
 0x76e   : > { %2761 = vmatpush.bf16.msrb.mxu3 %v3855_v10  ;;  %v4098_v10 = vld [vmem:[#allocation24 + $0x68] sm:$0xff] }
 0x76f   : > { %2986 = vmatpush.bf16.msrb.mxu1 %v4086_v9  ;;  %2995 = vmatpush.bf16.msra.mxu2 %v4098_v10 }
 0x772   : > { %2762 = vmatpush.bf16.msrb.mxu3 %v3847_v17 }
 0x773   : > { %2987 = vmatpush.bf16.msrb.mxu1 %v4085_v11  ;;  %2996 = vmatpush.bf16.msra.mxu2 %v4097_v12 }
 0x776   : > { %2763 = vmatpush.bf16.msrb.mxu3 %v3839_v24 }
 0x777   : > { %2997 = vmatpush.bf16.msra.mxu2 %v4096_v22 }
 0x779   : > { %3767 = vmatmul.msk.bf16.gmra.mxu3 %vm1756_vm4, %v2544_v31  ;;  %v3840_v31 = vld [vmem:[#allocation22 + $0x88] sm:$0xf0] }
 0x77a   : > { %v3843_v47 = vor.u32 %v4077_v46, %v3840_v31 }
 0x77b   : > { %2998 = vmatpush.bf16.msra.mxu2 %v4095_v15 }
 0x7ec   : > { %v2563_v30 = vpop.f32.mrf.mxu3 }
 0x7ed   : > { %v2572_v32 = vpack.c.bf16 %v2563_v30, %v2563_v30 }
 0x7ef   : > { %3834 = vmatmul.msk.bf16.vlgmr.msra.gmra.mxu1 %vm1551_vm2, %v2572_v32  ;;  %3835 = vmatmul.msk.bf16.vlgmr.msrb.gmra.mxu2 %vm1551_vm2, %v2572_v32  ;;  %v4094_v32 = vld [vmem:[#allocation24 + $0x48] sm:$0xff] }
 0x7f0   : > { %2999 = vmatpush.bf16.msra.mxu2 %v4094_v32 }
 0x7f4   : > { %v2565_v35 = vpop.f32.mrf.mxu3  ;;  %3000 = vmatpush.bf16.msra.mxu2 %v4093_v39 }
 0x7f5   : > { %v2573_v37 = vpack.c.bf16 %v2565_v35, %v2565_v35 }
 0x7f7   : > { %3800 = vmatmul.msk.bf16.vlgmr.msra.gmra.mxu0 %vm1551_vm2, %v2573_v37 }
 0x7f8   : > { %2773 = vmatpush.bf16.msra.mxu0 %v3867_v36 }
 0x7fc   : > { %v2568_v43 = vpop.f32.mrf.mxu3  ;;  %2774 = vmatpush.bf16.msra.mxu0 %v3859_v40 }
 0x7fd   : > { %v2574_v45 = vpack.c.bf16 %v2568_v43, %v2568_v43 }
 0x7ff   : > { %3868 = vmatmul.msk.bf16.vlgmr.msrb.gmra.mxu3 %vm1551_vm2, %v2574_v45 }
 0x800   : > { %2775 = vmatpush.bf16.msra.mxu0 %v3851_v44 }
 0x804   : > { %2776 = vmatpush.bf16.msra.mxu0 %v3843_v47  ;;  %v2570_v48 = vpop.f32.mrf.mxu3 }
 0x807   : > { %3801 = vmatmul.msk.bf16.vlgmr.msrb.gmra.mxu0 %vm1551_vm2, %v2573_v37 }
 0x817   : > { %3869 = vmatmul.msk.bf16.vlgmr.msra.gmra.mxu0 %vm1551_vm2, %v2574_v45 }
 0x86c   : > { %v2696_v49 = vpop.f32.mrf.mxu1 }
 0x872   : > { %v2709_v50 = vpop.f32.mrf.mxu2 }
 0x874   : > { %v2627_v51 = vpop.f32.mrf.mxu0  ;;  %v2698_v52 = vpop.f32.mrf.mxu1 }
 0x875   : > { %v2697_v58 = vadd.f32 %v2696_v49, %v2627_v51 }
 0x87a   : > { %v2711_v54 = vpop.f32.mrf.mxu2 }
 0x87c   : > { %v2629_v56 = vpop.f32.mrf.mxu0 }
 0x882   : > { %v2765_v59 = vpop.f32.mrf.mxu3 }
 0x883   : > { %v2782_v61 = vadd.f32 %v2765_v59, %v2697_v58 }
 0x884   : > { %v2640_v62 = vpop.f32.mrf.mxu0 }
 0x885   : > { %v3870_v63 = vmul.f32 -1.442695, %v2782_v61  ;;  %v2710_v13 = vadd.f32 %v2709_v50, %v2640_v62 }
 0x887   : > { %4271 = vpow2.f32 %v3870_v63 }
 0x88a   : > { %v2767_v2 = vpop.f32.mrf.mxu3 }
 0x88c   : > { %v2642_v4 = vpop.f32.mrf.mxu0 }
 0x88d   : > { %v4272_v6 = vpop.eup %4271 }
 0x88e   : > { %v2790_v8 = vadd.f32 1.0, %v4272_v6 }
 0x890   : > { %4273 = vrcp.f32 %v2790_v8  ;;  %v2803_v24 = vand.u32 2147483648, %v2790_v8  ;;  %v2801_v26 = vand.u32 2147483647, %v2790_v8  ;;  %vm2797_vm11 = vweird.f32 %v2790_v8 }
 0x891   : > { %4275 = vrcp.f32 %v4790_v21 }
 0x892   : > { %v2804_v30 = vor.u32 1.1754944e-38, %v2803_v24  ;;  %vm2802_vm13 = vcmp.eq.f32.partialorder %v2801_v26, 8.507059e+37 }
 0x894   : > { %v2778_v14 = vpop.f32.mrf.mxu0 }
 0x895   : > { %v2783_v16 = vadd.f32 %v2778_v14, %v2710_v13 }
 0x896   : > { %v4274_v17 = vpop.eup %4273 }
 0x897   : > { %v2793_v18 = vmul.f32 %v4274_v17, %v2790_v8  ;;  %v3871_v20 = vmul.f32 -1.442695, %v2783_v16  ;;  %vm2798_vm10 = vweird.f32 %v4274_v17  ;;  %v4276_v28 = vpop.eup %4275 }
 0x898   : > { %vm2799_vm12 = vmor %vm2797_vm11, %vm2798_vm10  ;;  %v2874_v37 = vmul.f32 8.0, %v4276_v28  ;;  %vm2878_vm14 = vweird.f32 %v4276_v28 }
 0x899   : > { %v2794_v23 = vsub.f32 1.0, %v2793_v18  ;;  %4277 = vpow2.f32 %v3871_v20 }
 0x89a   : > { %v2875_v41 = vsub.f32 1.0, %v2874_v37 }
 0x89b   : > { %v2795_v25 = vmul.f32 %v4274_v17, %v2794_v23 }
 0x89c   : > { %v2780_v27 = vpop.f32.mrf.mxu0  ;;  %v2876_v45 = vmul.f32 %v4276_v28, %v2875_v41 }
 0x89d   : > { %v2796_v29 = vadd.f32 %v4274_v17, %v2795_v25 }
 0x89e   : > { %v2877_v50 = vadd.f32 %v4276_v28, %v2876_v45 }
 0x89f   : > { %v4278_v33 = vpop.eup %4277  ;;  %v2800_v34 = vsel %vm2799_vm12, %v4274_v17, %v2796_v29 }
 0x8a0   : > { %v2791_v35 = vadd.f32 1.0, %v4278_v33  ;;  %v2805_v36 = vsel %vm2802_vm13, %v2804_v30, %v2800_v34  ;;  %v2879_v56 = vsel %vm2878_vm14, %v4276_v28, %v2877_v50 }
 0x8a1   : > { %v2822_v38 = vmul.f32 %v2805_v36, %v5344_v19 }
 0x8a2   : > { %4279 = vrcp.f32 %v2791_v35  ;;  %v2818_v49 = vand.u32 2147483648, %v2791_v35  ;;  %v2816_v19 = vand.u32 2147483647, %v2791_v35  ;;  %vm2812_vm0 = vweird.f32 %v2791_v35 }
 0x8a3   : > { %v2824_v40 = vpack.c.bf16 %v2822_v38, %v2822_v38 }
 0x8a4   : > { %v2819_v55 = vor.u32 1.1754944e-38, %v2818_v49  ;;  %vm2817_vm2 = vcmp.eq.f32.partialorder %v2816_v19, 8.507059e+37 }
 0x8a5   : > { %v2859_v42 = vunpack.c.l.bf16 %v2824_v40 }
 0x8a7   : > { %v2861_v43 = vrot.slane %v2859_v42, 4 }
 0x8a8   : > { %v4280_v44 = vpop.eup %4279 }
 0x8a9   : > { %v2808_v46 = vmul.f32 %v4280_v44, %v2791_v35  ;;  %v2862_v31 = vadd.f32 %v2861_v43, %v2859_v42  ;;  %vm2813_vm15 = vweird.f32 %v4280_v44 }
 0x8aa   : > { %vm2814_vm1 = vmor %vm2812_vm0, %vm2813_vm15 }
 0x8ab   : > { %v2809_v47 = vsub.f32 1.0, %v2808_v46  ;;  %v2863_v48 = vrot.slane %v2862_v31, 2 }
 0x8ad   : > { %v2810_v51 = vmul.f32 %v4280_v44, %v2809_v47  ;;  %v2864_v52 = vadd.f32 %v2863_v48, %v2862_v31 }
 0x8af   : > { %v2811_v53 = vadd.f32 %v4280_v44, %v2810_v51  ;;  %v2865_v54 = vrot.slane %v2864_v52, 1 }
 0x8b1   : > { %v2815_v57 = vsel %vm2814_vm1, %v4280_v44, %v2811_v53  ;;  %v2866_v58 = vadd.f32 %v2865_v54, %v2864_v52 }
 0x8b2   : > { %v2820_v59 = vsel %vm2817_vm2, %v2819_v55, %v2815_v57 }
 0x8b3   : > { %v2880_v60 = vmul.f32 %v2879_v56, %v2866_v58  ;;  %v2823_v61 = vmul.f32 %v2820_v59, %v5340_v7  ;;  %v2858_v7 = vld [vmem:[%s5392_s22] sm:$0x1] }
 0x8b5   : > { %v2882_v62 = vpack.c.bf16 %v2880_v60, %v2880_v60  ;;  %v2825_v63 = vpack.c.bf16 %v2823_v61, %v2823_v61 }
 0x8b7   : > { %2988 = vmatmul.bf16.vlgmr.msrb.gmra.mxu1 %v2882_v62  ;;  %v2860_v0 = vunpack.c.l.bf16 %v2825_v63 }
 0x8b9   : > { %v2867_v1 = vrot.slane %v2860_v0, 4 }
 0x8bb   : > { %v2868_v2 = vadd.f32 %v2867_v1, %v2860_v0 }
 0x8bd   : > { %v2869_v3 = vrot.slane %v2868_v2, 2 }
 0x8bf   : > { %v2870_v4 = vadd.f32 %v2869_v3, %v2868_v2 }
 0x8c1   : > { %v2871_v5 = vrot.slane %v2870_v4, 1 }
 0x8c3   : > { %v2872_v6 = vadd.f32 %v2871_v5, %v2870_v4 }
 0x8c5   : > { %v2881_v8 = vmul.f32 %v2879_v56, %v2872_v6 }
 0x8c7   : > { %v2883_v9 = vpack.c.bf16 %v2881_v8, %v2881_v8 }
 0x8c9   : > { %3001 = vmatmul.bf16.vlgmr.msra.gmra.mxu2 %v2883_v9 }
 0x934   : > { %v2989_v10 = vpop.f32.mrf.mxu1 }
 0x935   : > { %v2990_v12 = vadd.f32 %v2989_v10, %v2858_v7 }
 0x93c   : > { %v2991_v11 = vpop.f32.mrf.mxu1 }
 0x94c   : > { %v3002_v13 = vpop.f32.mrf.mxu2 }
 0x94d   : > { %v3003_v14 = vadd.f32 %v3002_v13, %v2990_v12 }
 0x94f   : > { %v3006_v16 = vperm.slane %v3003_v14, 0 }
 0x951   : > { %3007 = vst [vmem:[%s956_s7] sm:$0xff] %v3006_v16 }
 0x954   : > { %v3004_v17 = vpop.f32.mrf.mxu2 }
 0x955 PF: > { %s5425_s2 = sld [smem:[#allocation33_spill]] }
 0x95b   : > { %s41_s4 = sadd.s32 1, %s5425_s2  }
 0x95c   : > { %p38_p8 = scmp.ge.s32.totalorder %s41_s4, 4  }
 0x95e   :  { %40 = sbr.rel (!%p38_p8) target bundleno = 22 (0x16), region = 203 }
 0x963   :  { %3027 = vsyncpa [#allocation3], 1 }
 0x964   :  { %3029 = vsyncpa [#allocation3 + $0x1], 1 }
 0x965   :  { %3030 = vsyncpa [#allocation5], 1 }
 0x966   :  { %3031 = vsyncpa [#allocation8], 1 }
 0x967   :  { %3032 = vsyncpa [#allocation11], 1 }
 0x968   :  { %3033 = vsyncpa [#allocation14], 1 }
 0x969   :  { %3034 = vsyncpa [#allocation17], 1 }
 0x96a   :  { %3035 = vsyncpa [#allocation20], 1 }
 0x96b   :  { %3036 = vsyncpa [#allocation23], 1 }

</bundles_post_ra>
